<compile_context>
chip_gen: v6e
topology: v6e:2x2x1
jax: 0.10.0
libtpu: 0.0.40
codegen_flags: <defaults>
</compile_context>

<pallas_src>
import functools

import jax
import jax.numpy as jnp
from jax.experimental import pallas as pl
from jax.experimental.pallas import tpu as pltpu

# ---- small, module-consistent shapes -------------------------------------
CONTEXT_LEN = 8      # context_length (seq)
VOCAB = 64           # vocab_size
WIDTH = 32           # transformer_width (d_model)
HEADS = 4            # transformer_heads
LAYERS = 2           # transformer_layers
BATCH = 2
EPS = 1e-5           # torch.nn.LayerNorm default


def _layer_norm(x, g, b):
    mu = jnp.mean(x, axis=-1, keepdims=True)
    var = jnp.mean((x - mu) ** 2, axis=-1, keepdims=True)
    return (x - mu) * jax.lax.rsqrt(var + EPS) * g + b


# ---------------------------------------------------------------------------
# Fully fused kernel: one-hot embedding matmul -> L transformer blocks ->
# one-hot EOT gather -> ln_final -> (B, D).  Runs once (no grid), all weights
# resident in VMEM, activations stay in vregs as a lane-dense (B*L, D) slab.
# ---------------------------------------------------------------------------
def _clip_fused_kernel(onehot_ref, pos_ref, eot_ref, tok_ref,
                       wqkv_ref, wo_ref, wfc_ref, wpr_ref,
                       small_ref, lnf_ref, out_ref,
                       *, n_head, n_layers):
    BL, D = pos_ref.shape
    B = eot_ref.shape[0]
    L = BL // B
    H = n_head
    dh = D // H

    # token-embedding gather + positional add: one MXU matmul, no scalar loop
    x = jnp.dot(onehot_ref[...], tok_ref[...],
                preferred_element_type=jnp.float32) + pos_ref[...]   # (BL, D)

    # causal additive mask, hoisted once above all loops (already (1, L, L))
    row_i = jax.lax.broadcasted_iota(jnp.int32, (1, L, L), 1)
    col_i = jax.lax.broadcasted_iota(jnp.int32, (1, L, L), 2)
    causal = jnp.where(col_i > row_i, -jnp.inf, 0.0).astype(jnp.float32)

    # ---- transformer: static unrolled layer loop, weights resident --------
    for layer in range(n_layers):
        small = small_ref[layer]                         # (8, >=128) slab
        ln1_g, ln1_b = small[0:1, :D], small[1:2, :D]
        ln2_g, ln2_b = small[2:3, :D], small[3:4, :D]
        bo, bpr = small[4:5, :D], small[5:6, :D]
        bqkv = small[6:7, :3 * D]
        bfc = small[7:8, :4 * D]

        # attention branch: x + attn(ln_1(x))
        xn = _layer_norm(x, ln1_g, ln1_b)
        # fused q/k/v projection: one (BL, D)@(D, 3D) matmul; the 1/sqrt(dh)
        # scale is folded into the q columns / bias on the host.
        qkv = jnp.dot(xn, wqkv_ref[layer],
                      preferred_element_type=jnp.float32) + bqkv     # (BL, 3D)

        heads = []
        for h in range(H):
            qh = qkv[:, h * dh:(h + 1) * dh].reshape(B, L, dh)
            kh = qkv[:, D + h * dh:D + (h + 1) * dh].reshape(B, L, dh)
            vh = qkv[:, 2 * D + h * dh:2 * D + (h + 1) * dh].reshape(B, L, dh)
            s = jnp.einsum('bqd,bkd->bqk', qh, kh,
                           preferred_element_type=jnp.float32) + causal
            s = s - jnp.max(s, axis=-1, keepdims=True)
            p = jnp.exp(s)
            p = p / jnp.sum(p, axis=-1, keepdims=True)   # exact normalizer
            oh = jnp.einsum('bqk,bkd->bqd', p, vh,
                            preferred_element_type=jnp.float32)
            heads.append(oh.reshape(BL, dh))
        # lane-concatenate heads and do ONE output-projection matmul
        attn = jnp.concatenate(heads, axis=-1)                        # (BL, D)
        x = x + jnp.dot(attn, wo_ref[layer],
                        preferred_element_type=jnp.float32) + bo

        # MLP branch: x + c_proj(QuickGELU(c_fc(ln_2(x))))
        xn2 = _layer_norm(x, ln2_g, ln2_b)
        h1 = jnp.dot(xn2, wfc_ref[layer],
                     preferred_element_type=jnp.float32) + bfc
        h1 = h1 * jax.nn.sigmoid(1.702 * h1)                          # QuickGELU
        x = x + jnp.dot(h1, wpr_ref[layer],
                        preferred_element_type=jnp.float32) + bpr

    # EOT gather (one-hot selection built in the wrapper from jnp.argmax)
    xe = jnp.dot(eot_ref[...], x, preferred_element_type=jnp.float32)  # (B, D)
    out_ref[...] = _layer_norm(xe, lnf_ref[0:1, :],
                               lnf_ref[1:2, :]).astype(out_ref.dtype)


# ---------------------------------------------------------------------------
# Wrapper: one pallas_call, everything resident; the integer gathers are
# turned into one-hot selection matrices here (layout plumbing, not compute).
# ---------------------------------------------------------------------------
def clip_language_encoder(cap_tokens, kp, n_head=HEADS):
    B, L = cap_tokens.shape
    V, D = kp['tok_emb'].shape
    n_layers = kp['wqkv'].shape[0]

    onehot = jax.nn.one_hot(cap_tokens.reshape(-1), V, dtype=jnp.float32)  # (BL, V)
    pos_bl = jnp.tile(kp['pos_emb'], (B, 1))                               # (BL, D)
    eot = jnp.argmax(cap_tokens, axis=-1)                                  # (B,)
    eot_sel = jax.nn.one_hot(jnp.arange(B) * L + eot, B * L,
                             dtype=jnp.float32)                            # (B, BL)

    kernel = functools.partial(_clip_fused_kernel,
                               n_head=n_head, n_layers=n_layers)
    vmem = pl.BlockSpec(memory_space=pltpu.MemorySpace.VMEM)

    return pl.pallas_call(
        kernel,
        out_shape=jax.ShapeDtypeStruct((B, D), jnp.float32),
        in_specs=[vmem] * 10,
        out_specs=vmem,
    )(onehot, pos_bl, eot_sel, kp['tok_emb'], kp['wqkv'], kp['wo'],
      kp['wfc'], kp['wpr'], kp['small'], kp['lnf'])


# ---------------------------------------------------------------------------
# Host-side, one-time layout plumbing: pre-transpose weights (x @ W layout),
# fold the attention scale into the q projection, and pack all tiny per-layer
# vectors into one lane-dense (NL, 8, 128) slab.
# ---------------------------------------------------------------------------
def prepare_kernel_params(p, n_head=HEADS):
    NL, _, D = p['wqkv'].shape
    dh = D // n_head
    scale = dh ** -0.5

    wqkv = jnp.transpose(p['wqkv'], (0, 2, 1))          # (NL, D, 3D), [q|k|v]
    wqkv = wqkv.at[:, :, :D].multiply(scale)            # fold 1/sqrt(dh) into q
    wo = jnp.transpose(p['wo'], (0, 2, 1))               # (NL, D, D)
    wfc = jnp.transpose(p['wfc'], (0, 2, 1))              # (NL, D, 4D)
    wpr = jnp.transpose(p['wpr'], (0, 2, 1))              # (NL, 4D, D)

    bqkv = p['bqkv'].reshape(NL, 3 * D)
    bqkv = bqkv.at[:, :D].multiply(scale)

    slab = ((max(128, 4 * D) + 127) // 128) * 128
    small = jnp.zeros((NL, 8, slab), jnp.float32)
    packed_rows = [
        p['ln1_g'].reshape(NL, D), p['ln1_b'].reshape(NL, D),
        p['ln2_g'].reshape(NL, D), p['ln2_b'].reshape(NL, D),
        p['bo'].reshape(NL, D), p['bpr'].reshape(NL, D),
        bqkv, p['bfc'].reshape(NL, 4 * D),
    ]
    for r, vec in enumerate(packed_rows):
        small = small.at[:, r, :vec.shape[-1]].set(vec)

    lnf = jnp.concatenate([p['lnf_g'].reshape(1, D),
                           p['lnf_b'].reshape(1, D)], axis=0)  # (2, D)

    return {'tok_emb': p['tok_emb'], 'pos_emb': p['pos_emb'],
            'wqkv': wqkv, 'wo': wo, 'wfc': wfc, 'wpr': wpr,
            'small': small, 'lnf': lnf}


# ---------------------------------------------------------------------------
# Deterministic parameter init (same stds as initialize_parameters()), in the
# torch layout (used by the reference; converted once for the kernel).
# ---------------------------------------------------------------------------
def init_params(key):
    D, L, V, NL = WIDTH, CONTEXT_LEN, VOCAB, LAYERS
    attn_std = D ** -0.5
    proj_std = (D ** -0.5) * ((2 * NL) ** -0.5)
    fc_std = (2 * D) ** -0.5
    ks = jax.random.split(key, 10)
    n = jax.random.normal
    return {
        'tok_emb': 0.02 * n(ks[0], (V, D), jnp.float32),
        'pos_emb': 0.01 * n(ks[1], (L, D), jnp.float32),
        'ln1_g': jnp.ones((NL, 1, D), jnp.float32),
        'ln1_b': jnp.zeros((NL, 1, D), jnp.float32),
        'ln2_g': jnp.ones((NL, 1, D), jnp.float32),
        'ln2_b': jnp.zeros((NL, 1, D), jnp.float32),
        'lnf_g': jnp.ones((1, D), jnp.float32),
        'lnf_b': jnp.zeros((1, D), jnp.float32),
        'wqkv': attn_std * n(ks[2], (NL, 3 * D, D), jnp.float32),
        'bqkv': 0.01 * n(ks[3], (NL, 1, 3 * D), jnp.float32),
        'wo': proj_std * n(ks[4], (NL, D, D), jnp.float32),
        'bo': 0.01 * n(ks[5], (NL, 1, D), jnp.float32),
        'wfc': fc_std * n(ks[6], (NL, 4 * D, D), jnp.float32),
        'bfc': 0.01 * n(ks[7], (NL, 1, 4 * D), jnp.float32),
        'wpr': proj_std * n(ks[8], (NL, D, 4 * D), jnp.float32),
        'bpr': 0.01 * n(ks[9], (NL, 1, D), jnp.float32),
    }


# ---------------------------------------------------------------------------
# Pure-JAX reference (same math as the torch module) for correctness check.
# ---------------------------------------------------------------------------
def reference(cap_tokens, p):
    x = p['tok_emb'][cap_tokens] + p['pos_emb']
    B, L, D = x.shape
    dh = D // HEADS
    row = jnp.arange(L)[:, None]
    col = jnp.arange(L)[None, :]
    causal = jnp.where(col > row, -jnp.inf, 0.0).astype(jnp.float32)
    for l in range(LAYERS):
        xn = _layer_norm(x, p['ln1_g'][l], p['ln1_b'][l])
        qkv = xn.reshape(B * L, D) @ p['wqkv'][l].T + p['bqkv'][l]
        q = qkv[:, :D].reshape(B, L, HEADS, dh).transpose(0, 2, 1, 3) * dh ** -0.5
        k = qkv[:, D:2 * D].reshape(B, L, HEADS, dh).transpose(0, 2, 1, 3)
        v = qkv[:, 2 * D:].reshape(B, L, HEADS, dh).transpose(0, 2, 1, 3)
        s = jnp.einsum('bhqd,bhkd->bhqk', q, k) + causal
        a = jax.nn.softmax(s, axis=-1)
        o = jnp.einsum('bhqk,bhkd->bhqd', a, v).transpose(0, 2, 1, 3).reshape(B, L, D)
        x = x + (o.reshape(B * L, D) @ p['wo'][l].T + p['bo'][l]).reshape(B, L, D)
        xn2 = _layer_norm(x, p['ln2_g'][l], p['ln2_b'][l])
        h = xn2.reshape(B * L, D) @ p['wfc'][l].T + p['bfc'][l]
        h = h * jax.nn.sigmoid(1.702 * h)
        x = x + (h @ p['wpr'][l].T + p['bpr'][l]).reshape(B, L, D)
    x = _layer_norm(x, p['lnf_g'], p['lnf_b'])
    eot = jnp.argmax(cap_tokens, axis=-1)
    return x[jnp.arange(B), eot]


if __name__ == "__main__":
    key = jax.random.PRNGKey(0)
    pkey, tkey = jax.random.split(key)
    params = init_params(pkey)
    kparams = prepare_kernel_params(params)          # one-time layout plumbing
    cap_tokens = jax.random.randint(tkey, (BATCH, CONTEXT_LEN), 0, VOCAB,
                                    dtype=jnp.int32)

    out = jax.block_until_ready(clip_language_encoder(cap_tokens, kparams))
    assert out.shape == (BATCH, WIDTH) and out.dtype == jnp.float32

    ref = jax.block_until_ready(reference(cap_tokens, params))
    err = jnp.max(jnp.abs(out - ref))
    assert jnp.allclose(out, ref, atol=1e-4, rtol=1e-4), \
        f"mismatch: max abs err {err}"

    print("KERNEL_OK")
</pallas_src>

<mosaic_0001>
module attributes {stable_mosaic.version = 11 : i64} {
  func.func @_clip_fused_kernel(%arg0: memref<16x64xf32, #tpu.memory_space<vmem>>, %arg1: memref<16x32xf32, #tpu.memory_space<vmem>>, %arg2: memref<2x16xf32, #tpu.memory_space<vmem>>, %arg3: memref<64x32xf32, #tpu.memory_space<vmem>>, %arg4: memref<2x32x96xf32, #tpu.memory_space<vmem>>, %arg5: memref<2x32x32xf32, #tpu.memory_space<vmem>>, %arg6: memref<2x32x128xf32, #tpu.memory_space<vmem>>, %arg7: memref<2x128x32xf32, #tpu.memory_space<vmem>>, %arg8: memref<2x8x128xf32, #tpu.memory_space<vmem>>, %arg9: memref<2x32xf32, #tpu.memory_space<vmem>>, %arg10: memref<2x32xf32, #tpu.memory_space<vmem>>) attributes {dimension_semantics = [], scalar_prefetch = 0 : i64, scratch_operands = 0 : i64, tpu.core_type = #tpu.core_type<tc>} {
    %c0 = arith.constant 0 : index
    %c0_0 = arith.constant 0 : index
    %0 = vector.load %arg0[%c0, %c0_0] : memref<16x64xf32, #tpu.memory_space<vmem>>, vector<16x64xf32>
    %c0_1 = arith.constant 0 : index
    %c0_2 = arith.constant 0 : index
    %1 = vector.load %arg3[%c0_1, %c0_2] : memref<64x32xf32, #tpu.memory_space<vmem>>, vector<64x32xf32>
    %cst = arith.constant dense<0.000000e+00> : vector<16x32xf32>
    %2 = tpu.matmul %0, %1, %cst {dimension_numbers = #tpu.dot_dimension_numbers<[1], [0], [0], [1], [0, 0, 1, 1], [], []>} : vector<16x64xf32>, vector<64x32xf32>, vector<16x32xf32> -> vector<16x32xf32>
    %c0_3 = arith.constant 0 : index
    %c0_4 = arith.constant 0 : index
    %3 = vector.load %arg1[%c0_3, %c0_4] : memref<16x32xf32, #tpu.memory_space<vmem>>, vector<16x32xf32>
    %4 = arith.addf %2, %3 : vector<16x32xf32>
    %5 = tpu.iota {dimensions = array<i32: 1>} : vector<1x8x8xi32>
    %6 = tpu.iota {dimensions = array<i32: 2>} : vector<1x8x8xi32>
    %7 = arith.cmpi sgt, %6, %5 : vector<1x8x8xi32>
    %cst_5 = arith.constant 0xFF800000 : f32
    %cst_6 = arith.constant 0.000000e+00 : f32
    %8 = vector.broadcast %cst_5 : f32 to vector<1x8x8xf32>
    %9 = vector.broadcast %cst_6 : f32 to vector<1x8x8xf32>
    %10 = arith.select %7, %8, %9 : vector<1x8x8xi1>, vector<1x8x8xf32>
    %c0_7 = arith.constant 0 : index
    %c0_8 = arith.constant 0 : index
    %c0_9 = arith.constant 0 : index
    %11 = vector.load %arg8[%c0_7, %c0_8, %c0_9] : memref<2x8x128xf32, #tpu.memory_space<vmem>>, vector<1x8x128xf32>
    %12 = vector.shape_cast %11 : vector<1x8x128xf32> to vector<8x128xf32>
    %13 = vector.extract_strided_slice %12 {offsets = [0, 0], sizes = [1, 32], strides = [1, 1]} : vector<8x128xf32> to vector<1x32xf32>
    %14 = vector.extract_strided_slice %12 {offsets = [1, 0], sizes = [1, 32], strides = [1, 1]} : vector<8x128xf32> to vector<1x32xf32>
    %15 = vector.extract_strided_slice %12 {offsets = [2, 0], sizes = [1, 32], strides = [1, 1]} : vector<8x128xf32> to vector<1x32xf32>
    %16 = vector.extract_strided_slice %12 {offsets = [3, 0], sizes = [1, 32], strides = [1, 1]} : vector<8x128xf32> to vector<1x32xf32>
    %17 = vector.extract_strided_slice %12 {offsets = [4, 0], sizes = [1, 32], strides = [1, 1]} : vector<8x128xf32> to vector<1x32xf32>
    %18 = vector.extract_strided_slice %12 {offsets = [5, 0], sizes = [1, 32], strides = [1, 1]} : vector<8x128xf32> to vector<1x32xf32>
    %19 = vector.extract_strided_slice %12 {offsets = [6, 0], sizes = [1, 96], strides = [1, 1]} : vector<8x128xf32> to vector<1x96xf32>
    %20 = vector.extract_strided_slice %12 {offsets = [7, 0], sizes = [1, 128], strides = [1, 1]} : vector<8x128xf32> to vector<1x128xf32>
    %cst_10 = arith.constant dense<0.000000e+00> : vector<16xf32>
    %21 = vector.multi_reduction <add>, %4, %cst_10 [1] : vector<16x32xf32> to vector<16xf32>
    %22 = vector.shape_cast %21 : vector<16xf32> to vector<16x1xf32>
    %cst_11 = arith.constant 3.200000e+01 : f32
    %23 = vector.broadcast %cst_11 : f32 to vector<16x1xf32>
    %24 = arith.divf %22, %23 : vector<16x1xf32>
    %25 = vector.broadcast %24 : vector<16x1xf32> to vector<16x32xf32>
    %26 = arith.subf %4, %25 : vector<16x32xf32>
    %27 = arith.mulf %26, %26 : vector<16x32xf32>
    %cst_12 = arith.constant dense<0.000000e+00> : vector<16xf32>
    %28 = vector.multi_reduction <add>, %27, %cst_12 [1] : vector<16x32xf32> to vector<16xf32>
    %29 = vector.shape_cast %28 : vector<16xf32> to vector<16x1xf32>
    %cst_13 = arith.constant 3.200000e+01 : f32
    %30 = vector.broadcast %cst_13 : f32 to vector<16x1xf32>
    %31 = arith.divf %29, %30 : vector<16x1xf32>
    %32 = vector.broadcast %24 : vector<16x1xf32> to vector<16x32xf32>
    %33 = arith.subf %4, %32 : vector<16x32xf32>
    %cst_14 = arith.constant 9.99999974E-6 : f32
    %34 = vector.broadcast %cst_14 : f32 to vector<16x1xf32>
    %35 = arith.addf %31, %34 : vector<16x1xf32>
    %36 = math.rsqrt %35 : vector<16x1xf32>
    %37 = vector.broadcast %36 : vector<16x1xf32> to vector<16x32xf32>
    %38 = arith.mulf %33, %37 : vector<16x32xf32>
    %39 = vector.broadcast %13 : vector<1x32xf32> to vector<16x32xf32>
    %40 = arith.mulf %38, %39 : vector<16x32xf32>
    %41 = vector.broadcast %14 : vector<1x32xf32> to vector<16x32xf32>
    %42 = arith.addf %40, %41 : vector<16x32xf32>
    %c0_15 = arith.constant 0 : index
    %c0_16 = arith.constant 0 : index
    %c0_17 = arith.constant 0 : index
    %43 = vector.load %arg4[%c0_15, %c0_16, %c0_17] : memref<2x32x96xf32, #tpu.memory_space<vmem>>, vector<1x32x96xf32>
    %44 = vector.shape_cast %43 : vector<1x32x96xf32> to vector<32x96xf32>
    %cst_18 = arith.constant dense<0.000000e+00> : vector<16x96xf32>
    %45 = tpu.matmul %42, %44, %cst_18 {dimension_numbers = #tpu.dot_dimension_numbers<[1], [0], [0], [1], [0, 0, 1, 1], [], []>} : vector<16x32xf32>, vector<32x96xf32>, vector<16x96xf32> -> vector<16x96xf32>
    %46 = vector.broadcast %19 : vector<1x96xf32> to vector<16x96xf32>
    %47 = arith.addf %45, %46 : vector<16x96xf32>
    %48 = vector.extract_strided_slice %47 {offsets = [0, 0], sizes = [16, 8], strides = [1, 1]} : vector<16x96xf32> to vector<16x8xf32>
    %49 = vector.shape_cast %48 : vector<16x8xf32> to vector<2x8x8xf32>
    %50 = vector.extract_strided_slice %47 {offsets = [0, 32], sizes = [16, 8], strides = [1, 1]} : vector<16x96xf32> to vector<16x8xf32>
    %51 = vector.shape_cast %50 : vector<16x8xf32> to vector<2x8x8xf32>
    %52 = vector.extract_strided_slice %47 {offsets = [0, 64], sizes = [16, 8], strides = [1, 1]} : vector<16x96xf32> to vector<16x8xf32>
    %53 = vector.shape_cast %52 : vector<16x8xf32> to vector<2x8x8xf32>
    "tpu.trace_start"() <{level = 10 : i32, message = "bqd,bkd->bqk"}> : () -> ()
    %cst_19 = arith.constant dense<0.000000e+00> : vector<2x8x8xf32>
    %54 = tpu.matmul %49, %51, %cst_19 {dimension_numbers = #tpu.dot_dimension_numbers<[2], [2], [1], [1], [0, 0, 0, 1, 1, 1], [0], [0]>} : vector<2x8x8xf32>, vector<2x8x8xf32>, vector<2x8x8xf32> -> vector<2x8x8xf32>
    "tpu.trace_stop"() : () -> ()
    %55 = vector.broadcast %10 : vector<1x8x8xf32> to vector<2x8x8xf32>
    %56 = arith.addf %54, %55 : vector<2x8x8xf32>
    %cst_20 = arith.constant dense<0xFF800000> : vector<2x8xf32>
    %57 = vector.multi_reduction <maximumf>, %56, %cst_20 [2] : vector<2x8x8xf32> to vector<2x8xf32>
    %58 = vector.shape_cast %57 : vector<2x8xf32> to vector<2x8x1xf32>
    %59 = vector.broadcast %58 : vector<2x8x1xf32> to vector<2x8x8xf32>
    %60 = arith.subf %56, %59 : vector<2x8x8xf32>
    %61 = math.exp %60 : vector<2x8x8xf32>
    %cst_21 = arith.constant dense<0.000000e+00> : vector<2x8xf32>
    %62 = vector.multi_reduction <add>, %61, %cst_21 [2] : vector<2x8x8xf32> to vector<2x8xf32>
    %63 = vector.shape_cast %62 : vector<2x8xf32> to vector<2x8x1xf32>
    %64 = vector.broadcast %63 : vector<2x8x1xf32> to vector<2x8x8xf32>
    %65 = arith.divf %61, %64 : vector<2x8x8xf32>
    "tpu.trace_start"() <{level = 10 : i32, message = "bqk,bkd->bqd"}> : () -> ()
    %cst_22 = arith.constant dense<0.000000e+00> : vector<2x8x8xf32>
    %66 = tpu.matmul %65, %53, %cst_22 {dimension_numbers = #tpu.dot_dimension_numbers<[2], [1], [1], [2], [0, 0, 0, 1, 1, 2], [0], [0]>} : vector<2x8x8xf32>, vector<2x8x8xf32>, vector<2x8x8xf32> -> vector<2x8x8xf32>
    "tpu.trace_stop"() : () -> ()
    %67 = vector.shape_cast %66 : vector<2x8x8xf32> to vector<16x8xf32>
    %68 = vector.extract_strided_slice %47 {offsets = [0, 8], sizes = [16, 8], strides = [1, 1]} : vector<16x96xf32> to vector<16x8xf32>
    %69 = vector.shape_cast %68 : vector<16x8xf32> to vector<2x8x8xf32>
    %70 = vector.extract_strided_slice %47 {offsets = [0, 40], sizes = [16, 8], strides = [1, 1]} : vector<16x96xf32> to vector<16x8xf32>
    %71 = vector.shape_cast %70 : vector<16x8xf32> to vector<2x8x8xf32>
    %72 = vector.extract_strided_slice %47 {offsets = [0, 72], sizes = [16, 8], strides = [1, 1]} : vector<16x96xf32> to vector<16x8xf32>
    %73 = vector.shape_cast %72 : vector<16x8xf32> to vector<2x8x8xf32>
    "tpu.trace_start"() <{level = 10 : i32, message = "bqd,bkd->bqk"}> : () -> ()
    %cst_23 = arith.constant dense<0.000000e+00> : vector<2x8x8xf32>
    %74 = tpu.matmul %69, %71, %cst_23 {dimension_numbers = #tpu.dot_dimension_numbers<[2], [2], [1], [1], [0, 0, 0, 1, 1, 1], [0], [0]>} : vector<2x8x8xf32>, vector<2x8x8xf32>, vector<2x8x8xf32> -> vector<2x8x8xf32>
    "tpu.trace_stop"() : () -> ()
    %75 = vector.broadcast %10 : vector<1x8x8xf32> to vector<2x8x8xf32>
    %76 = arith.addf %74, %75 : vector<2x8x8xf32>
    %cst_24 = arith.constant dense<0xFF800000> : vector<2x8xf32>
    %77 = vector.multi_reduction <maximumf>, %76, %cst_24 [2] : vector<2x8x8xf32> to vector<2x8xf32>
    %78 = vector.shape_cast %77 : vector<2x8xf32> to vector<2x8x1xf32>
    %79 = vector.broadcast %78 : vector<2x8x1xf32> to vector<2x8x8xf32>
    %80 = arith.subf %76, %79 : vector<2x8x8xf32>
    %81 = math.exp %80 : vector<2x8x8xf32>
    %cst_25 = arith.constant dense<0.000000e+00> : vector<2x8xf32>
    %82 = vector.multi_reduction <add>, %81, %cst_25 [2] : vector<2x8x8xf32> to vector<2x8xf32>
    %83 = vector.shape_cast %82 : vector<2x8xf32> to vector<2x8x1xf32>
    %84 = vector.broadcast %83 : vector<2x8x1xf32> to vector<2x8x8xf32>
    %85 = arith.divf %81, %84 : vector<2x8x8xf32>
    "tpu.trace_start"() <{level = 10 : i32, message = "bqk,bkd->bqd"}> : () -> ()
    %cst_26 = arith.constant dense<0.000000e+00> : vector<2x8x8xf32>
    %86 = tpu.matmul %85, %73, %cst_26 {dimension_numbers = #tpu.dot_dimension_numbers<[2], [1], [1], [2], [0, 0, 0, 1, 1, 2], [0], [0]>} : vector<2x8x8xf32>, vector<2x8x8xf32>, vector<2x8x8xf32> -> vector<2x8x8xf32>
    "tpu.trace_stop"() : () -> ()
    %87 = vector.shape_cast %86 : vector<2x8x8xf32> to vector<16x8xf32>
    %88 = vector.extract_strided_slice %47 {offsets = [0, 16], sizes = [16, 8], strides = [1, 1]} : vector<16x96xf32> to vector<16x8xf32>
    %89 = vector.shape_cast %88 : vector<16x8xf32> to vector<2x8x8xf32>
    %90 = vector.extract_strided_slice %47 {offsets = [0, 48], sizes = [16, 8], strides = [1, 1]} : vector<16x96xf32> to vector<16x8xf32>
    %91 = vector.shape_cast %90 : vector<16x8xf32> to vector<2x8x8xf32>
    %92 = vector.extract_strided_slice %47 {offsets = [0, 80], sizes = [16, 8], strides = [1, 1]} : vector<16x96xf32> to vector<16x8xf32>
    %93 = vector.shape_cast %92 : vector<16x8xf32> to vector<2x8x8xf32>
    "tpu.trace_start"() <{level = 10 : i32, message = "bqd,bkd->bqk"}> : () -> ()
    %cst_27 = arith.constant dense<0.000000e+00> : vector<2x8x8xf32>
    %94 = tpu.matmul %89, %91, %cst_27 {dimension_numbers = #tpu.dot_dimension_numbers<[2], [2], [1], [1], [0, 0, 0, 1, 1, 1], [0], [0]>} : vector<2x8x8xf32>, vector<2x8x8xf32>, vector<2x8x8xf32> -> vector<2x8x8xf32>
    "tpu.trace_stop"() : () -> ()
    %95 = vector.broadcast %10 : vector<1x8x8xf32> to vector<2x8x8xf32>
    %96 = arith.addf %94, %95 : vector<2x8x8xf32>
    %cst_28 = arith.constant dense<0xFF800000> : vector<2x8xf32>
    %97 = vector.multi_reduction <maximumf>, %96, %cst_28 [2] : vector<2x8x8xf32> to vector<2x8xf32>
    %98 = vector.shape_cast %97 : vector<2x8xf32> to vector<2x8x1xf32>
    %99 = vector.broadcast %98 : vector<2x8x1xf32> to vector<2x8x8xf32>
    %100 = arith.subf %96, %99 : vector<2x8x8xf32>
    %101 = math.exp %100 : vector<2x8x8xf32>
    %cst_29 = arith.constant dense<0.000000e+00> : vector<2x8xf32>
    %102 = vector.multi_reduction <add>, %101, %cst_29 [2] : vector<2x8x8xf32> to vector<2x8xf32>
    %103 = vector.shape_cast %102 : vector<2x8xf32> to vector<2x8x1xf32>
    %104 = vector.broadcast %103 : vector<2x8x1xf32> to vector<2x8x8xf32>
    %105 = arith.divf %101, %104 : vector<2x8x8xf32>
    "tpu.trace_start"() <{level = 10 : i32, message = "bqk,bkd->bqd"}> : () -> ()
    %cst_30 = arith.constant dense<0.000000e+00> : vector<2x8x8xf32>
    %106 = tpu.matmul %105, %93, %cst_30 {dimension_numbers = #tpu.dot_dimension_numbers<[2], [1], [1], [2], [0, 0, 0, 1, 1, 2], [0], [0]>} : vector<2x8x8xf32>, vector<2x8x8xf32>, vector<2x8x8xf32> -> vector<2x8x8xf32>
    "tpu.trace_stop"() : () -> ()
    %107 = vector.shape_cast %106 : vector<2x8x8xf32> to vector<16x8xf32>
    %108 = vector.extract_strided_slice %47 {offsets = [0, 24], sizes = [16, 8], strides = [1, 1]} : vector<16x96xf32> to vector<16x8xf32>
    %109 = vector.shape_cast %108 : vector<16x8xf32> to vector<2x8x8xf32>
    %110 = vector.extract_strided_slice %47 {offsets = [0, 56], sizes = [16, 8], strides = [1, 1]} : vector<16x96xf32> to vector<16x8xf32>
    %111 = vector.shape_cast %110 : vector<16x8xf32> to vector<2x8x8xf32>
    %112 = vector.extract_strided_slice %47 {offsets = [0, 88], sizes = [16, 8], strides = [1, 1]} : vector<16x96xf32> to vector<16x8xf32>
    %113 = vector.shape_cast %112 : vector<16x8xf32> to vector<2x8x8xf32>
    "tpu.trace_start"() <{level = 10 : i32, message = "bqd,bkd->bqk"}> : () -> ()
    %cst_31 = arith.constant dense<0.000000e+00> : vector<2x8x8xf32>
    %114 = tpu.matmul %109, %111, %cst_31 {dimension_numbers = #tpu.dot_dimension_numbers<[2], [2], [1], [1], [0, 0, 0, 1, 1, 1], [0], [0]>} : vector<2x8x8xf32>, vector<2x8x8xf32>, vector<2x8x8xf32> -> vector<2x8x8xf32>
    "tpu.trace_stop"() : () -> ()
    %115 = vector.broadcast %10 : vector<1x8x8xf32> to vector<2x8x8xf32>
    %116 = arith.addf %114, %115 : vector<2x8x8xf32>
    %cst_32 = arith.constant dense<0xFF800000> : vector<2x8xf32>
    %117 = vector.multi_reduction <maximumf>, %116, %cst_32 [2] : vector<2x8x8xf32> to vector<2x8xf32>
    %118 = vector.shape_cast %117 : vector<2x8xf32> to vector<2x8x1xf32>
    %119 = vector.broadcast %118 : vector<2x8x1xf32> to vector<2x8x8xf32>
    %120 = arith.subf %116, %119 : vector<2x8x8xf32>
    %121 = math.exp %120 : vector<2x8x8xf32>
    %cst_33 = arith.constant dense<0.000000e+00> : vector<2x8xf32>
    %122 = vector.multi_reduction <add>, %121, %cst_33 [2] : vector<2x8x8xf32> to vector<2x8xf32>
    %123 = vector.shape_cast %122 : vector<2x8xf32> to vector<2x8x1xf32>
    %124 = vector.broadcast %123 : vector<2x8x1xf32> to vector<2x8x8xf32>
    %125 = arith.divf %121, %124 : vector<2x8x8xf32>
    "tpu.trace_start"() <{level = 10 : i32, message = "bqk,bkd->bqd"}> : () -> ()
    %cst_34 = arith.constant dense<0.000000e+00> : vector<2x8x8xf32>
    %126 = tpu.matmul %125, %113, %cst_34 {dimension_numbers = #tpu.dot_dimension_numbers<[2], [1], [1], [2], [0, 0, 0, 1, 1, 2], [0], [0]>} : vector<2x8x8xf32>, vector<2x8x8xf32>, vector<2x8x8xf32> -> vector<2x8x8xf32>
    "tpu.trace_stop"() : () -> ()
    %127 = vector.shape_cast %126 : vector<2x8x8xf32> to vector<16x8xf32>
    %128 = tpu.concatenate %67, %87, %107, %127 in 1 : vector<16x8xf32>, vector<16x8xf32>, vector<16x8xf32>, vector<16x8xf32> -> vector<16x32xf32>
    %c0_35 = arith.constant 0 : index
    %c0_36 = arith.constant 0 : index
    %c0_37 = arith.constant 0 : index
    %129 = vector.load %arg5[%c0_35, %c0_36, %c0_37] : memref<2x32x32xf32, #tpu.memory_space<vmem>>, vector<1x32x32xf32>
    %130 = vector.shape_cast %129 : vector<1x32x32xf32> to vector<32x32xf32>
    %cst_38 = arith.constant dense<0.000000e+00> : vector<16x32xf32>
    %131 = tpu.matmul %128, %130, %cst_38 {dimension_numbers = #tpu.dot_dimension_numbers<[1], [0], [0], [1], [0, 0, 1, 1], [], []>} : vector<16x32xf32>, vector<32x32xf32>, vector<16x32xf32> -> vector<16x32xf32>
    %132 = arith.addf %4, %131 : vector<16x32xf32>
    %133 = vector.broadcast %17 : vector<1x32xf32> to vector<16x32xf32>
    %134 = arith.addf %132, %133 : vector<16x32xf32>
    %cst_39 = arith.constant dense<0.000000e+00> : vector<16xf32>
    %135 = vector.multi_reduction <add>, %134, %cst_39 [1] : vector<16x32xf32> to vector<16xf32>
    %136 = vector.shape_cast %135 : vector<16xf32> to vector<16x1xf32>
    %cst_40 = arith.constant 3.200000e+01 : f32
    %137 = vector.broadcast %cst_40 : f32 to vector<16x1xf32>
    %138 = arith.divf %136, %137 : vector<16x1xf32>
    %139 = vector.broadcast %138 : vector<16x1xf32> to vector<16x32xf32>
    %140 = arith.subf %134, %139 : vector<16x32xf32>
    %141 = arith.mulf %140, %140 : vector<16x32xf32>
    %cst_41 = arith.constant dense<0.000000e+00> : vector<16xf32>
    %142 = vector.multi_reduction <add>, %141, %cst_41 [1] : vector<16x32xf32> to vector<16xf32>
    %143 = vector.shape_cast %142 : vector<16xf32> to vector<16x1xf32>
    %cst_42 = arith.constant 3.200000e+01 : f32
    %144 = vector.broadcast %cst_42 : f32 to vector<16x1xf32>
    %145 = arith.divf %143, %144 : vector<16x1xf32>
    %146 = vector.broadcast %138 : vector<16x1xf32> to vector<16x32xf32>
    %147 = arith.subf %134, %146 : vector<16x32xf32>
    %cst_43 = arith.constant 9.99999974E-6 : f32
    %148 = vector.broadcast %cst_43 : f32 to vector<16x1xf32>
    %149 = arith.addf %145, %148 : vector<16x1xf32>
    %150 = math.rsqrt %149 : vector<16x1xf32>
    %151 = vector.broadcast %150 : vector<16x1xf32> to vector<16x32xf32>
    %152 = arith.mulf %147, %151 : vector<16x32xf32>
    %153 = vector.broadcast %15 : vector<1x32xf32> to vector<16x32xf32>
    %154 = arith.mulf %152, %153 : vector<16x32xf32>
    %155 = vector.broadcast %16 : vector<1x32xf32> to vector<16x32xf32>
    %156 = arith.addf %154, %155 : vector<16x32xf32>
    %c0_44 = arith.constant 0 : index
    %c0_45 = arith.constant 0 : index
    %c0_46 = arith.constant 0 : index
    %157 = vector.load %arg6[%c0_44, %c0_45, %c0_46] : memref<2x32x128xf32, #tpu.memory_space<vmem>>, vector<1x32x128xf32>
    %158 = vector.shape_cast %157 : vector<1x32x128xf32> to vector<32x128xf32>
    %cst_47 = arith.constant dense<0.000000e+00> : vector<16x128xf32>
    %159 = tpu.matmul %156, %158, %cst_47 {dimension_numbers = #tpu.dot_dimension_numbers<[1], [0], [0], [1], [0, 0, 1, 1], [], []>} : vector<16x32xf32>, vector<32x128xf32>, vector<16x128xf32> -> vector<16x128xf32>
    %160 = vector.broadcast %20 : vector<1x128xf32> to vector<16x128xf32>
    %161 = arith.addf %159, %160 : vector<16x128xf32>
    %cst_48 = arith.constant 1.702000e+00 : f32
    %162 = vector.broadcast %cst_48 : f32 to vector<16x128xf32>
    %163 = arith.mulf %162, %161 : vector<16x128xf32>
    %164 = arith.negf %163 : vector<16x128xf32>
    %165 = math.exp %164 : vector<16x128xf32>
    %cst_49 = arith.constant 1.000000e+00 : f32
    %166 = vector.broadcast %cst_49 : f32 to vector<16x128xf32>
    %167 = arith.addf %166, %165 : vector<16x128xf32>
    %168 = arith.divf %166, %167 : vector<16x128xf32>
    %169 = arith.mulf %161, %168 : vector<16x128xf32>
    %c0_50 = arith.constant 0 : index
    %c0_51 = arith.constant 0 : index
    %c0_52 = arith.constant 0 : index
    %170 = vector.load %arg7[%c0_50, %c0_51, %c0_52] : memref<2x128x32xf32, #tpu.memory_space<vmem>>, vector<1x128x32xf32>
    %171 = vector.shape_cast %170 : vector<1x128x32xf32> to vector<128x32xf32>
    %cst_53 = arith.constant dense<0.000000e+00> : vector<16x32xf32>
    %172 = tpu.matmul %169, %171, %cst_53 {dimension_numbers = #tpu.dot_dimension_numbers<[1], [0], [0], [1], [0, 0, 1, 1], [], []>} : vector<16x128xf32>, vector<128x32xf32>, vector<16x32xf32> -> vector<16x32xf32>
    %173 = arith.addf %134, %172 : vector<16x32xf32>
    %174 = vector.broadcast %18 : vector<1x32xf32> to vector<16x32xf32>
    %175 = arith.addf %173, %174 : vector<16x32xf32>
    %c1 = arith.constant 1 : index
    %c0_54 = arith.constant 0 : index
    %c0_55 = arith.constant 0 : index
    %176 = vector.load %arg8[%c1, %c0_54, %c0_55] : memref<2x8x128xf32, #tpu.memory_space<vmem>>, vector<1x8x128xf32>
    %177 = vector.shape_cast %176 : vector<1x8x128xf32> to vector<8x128xf32>
    %178 = vector.extract_strided_slice %177 {offsets = [0, 0], sizes = [1, 32], strides = [1, 1]} : vector<8x128xf32> to vector<1x32xf32>
    %179 = vector.extract_strided_slice %177 {offsets = [1, 0], sizes = [1, 32], strides = [1, 1]} : vector<8x128xf32> to vector<1x32xf32>
    %180 = vector.extract_strided_slice %177 {offsets = [2, 0], sizes = [1, 32], strides = [1, 1]} : vector<8x128xf32> to vector<1x32xf32>
    %181 = vector.extract_strided_slice %177 {offsets = [3, 0], sizes = [1, 32], strides = [1, 1]} : vector<8x128xf32> to vector<1x32xf32>
    %182 = vector.extract_strided_slice %177 {offsets = [4, 0], sizes = [1, 32], strides = [1, 1]} : vector<8x128xf32> to vector<1x32xf32>
    %183 = vector.extract_strided_slice %177 {offsets = [5, 0], sizes = [1, 32], strides = [1, 1]} : vector<8x128xf32> to vector<1x32xf32>
    %184 = vector.extract_strided_slice %177 {offsets = [6, 0], sizes = [1, 96], strides = [1, 1]} : vector<8x128xf32> to vector<1x96xf32>
    %185 = vector.extract_strided_slice %177 {offsets = [7, 0], sizes = [1, 128], strides = [1, 1]} : vector<8x128xf32> to vector<1x128xf32>
    %cst_56 = arith.constant dense<0.000000e+00> : vector<16xf32>
    %186 = vector.multi_reduction <add>, %175, %cst_56 [1] : vector<16x32xf32> to vector<16xf32>
    %187 = vector.shape_cast %186 : vector<16xf32> to vector<16x1xf32>
    %cst_57 = arith.constant 3.200000e+01 : f32
    %188 = vector.broadcast %cst_57 : f32 to vector<16x1xf32>
    %189 = arith.divf %187, %188 : vector<16x1xf32>
    %190 = vector.broadcast %189 : vector<16x1xf32> to vector<16x32xf32>
    %191 = arith.subf %175, %190 : vector<16x32xf32>
    %192 = arith.mulf %191, %191 : vector<16x32xf32>
    %cst_58 = arith.constant dense<0.000000e+00> : vector<16xf32>
    %193 = vector.multi_reduction <add>, %192, %cst_58 [1] : vector<16x32xf32> to vector<16xf32>
    %194 = vector.shape_cast %193 : vector<16xf32> to vector<16x1xf32>
    %cst_59 = arith.constant 3.200000e+01 : f32
    %195 = vector.broadcast %cst_59 : f32 to vector<16x1xf32>
    %196 = arith.divf %194, %195 : vector<16x1xf32>
    %197 = vector.broadcast %189 : vector<16x1xf32> to vector<16x32xf32>
    %198 = arith.subf %175, %197 : vector<16x32xf32>
    %cst_60 = arith.constant 9.99999974E-6 : f32
    %199 = vector.broadcast %cst_60 : f32 to vector<16x1xf32>
    %200 = arith.addf %196, %199 : vector<16x1xf32>
    %201 = math.rsqrt %200 : vector<16x1xf32>
    %202 = vector.broadcast %201 : vector<16x1xf32> to vector<16x32xf32>
    %203 = arith.mulf %198, %202 : vector<16x32xf32>
    %204 = vector.broadcast %178 : vector<1x32xf32> to vector<16x32xf32>
    %205 = arith.mulf %203, %204 : vector<16x32xf32>
    %206 = vector.broadcast %179 : vector<1x32xf32> to vector<16x32xf32>
    %207 = arith.addf %205, %206 : vector<16x32xf32>
    %c1_61 = arith.constant 1 : index
    %c0_62 = arith.constant 0 : index
    %c0_63 = arith.constant 0 : index
    %208 = vector.load %arg4[%c1_61, %c0_62, %c0_63] : memref<2x32x96xf32, #tpu.memory_space<vmem>>, vector<1x32x96xf32>
    %209 = vector.shape_cast %208 : vector<1x32x96xf32> to vector<32x96xf32>
    %cst_64 = arith.constant dense<0.000000e+00> : vector<16x96xf32>
    %210 = tpu.matmul %207, %209, %cst_64 {dimension_numbers = #tpu.dot_dimension_numbers<[1], [0], [0], [1], [0, 0, 1, 1], [], []>} : vector<16x32xf32>, vector<32x96xf32>, vector<16x96xf32> -> vector<16x96xf32>
    %211 = vector.broadcast %184 : vector<1x96xf32> to vector<16x96xf32>
    %212 = arith.addf %210, %211 : vector<16x96xf32>
    %213 = vector.extract_strided_slice %212 {offsets = [0, 0], sizes = [16, 8], strides = [1, 1]} : vector<16x96xf32> to vector<16x8xf32>
    %214 = vector.shape_cast %213 : vector<16x8xf32> to vector<2x8x8xf32>
    %215 = vector.extract_strided_slice %212 {offsets = [0, 32], sizes = [16, 8], strides = [1, 1]} : vector<16x96xf32> to vector<16x8xf32>
    %216 = vector.shape_cast %215 : vector<16x8xf32> to vector<2x8x8xf32>
    %217 = vector.extract_strided_slice %212 {offsets = [0, 64], sizes = [16, 8], strides = [1, 1]} : vector<16x96xf32> to vector<16x8xf32>
    %218 = vector.shape_cast %217 : vector<16x8xf32> to vector<2x8x8xf32>
    "tpu.trace_start"() <{level = 10 : i32, message = "bqd,bkd->bqk"}> : () -> ()
    %cst_65 = arith.constant dense<0.000000e+00> : vector<2x8x8xf32>
    %219 = tpu.matmul %214, %216, %cst_65 {dimension_numbers = #tpu.dot_dimension_numbers<[2], [2], [1], [1], [0, 0, 0, 1, 1, 1], [0], [0]>} : vector<2x8x8xf32>, vector<2x8x8xf32>, vector<2x8x8xf32> -> vector<2x8x8xf32>
    "tpu.trace_stop"() : () -> ()
    %220 = vector.broadcast %10 : vector<1x8x8xf32> to vector<2x8x8xf32>
    %221 = arith.addf %219, %220 : vector<2x8x8xf32>
    %cst_66 = arith.constant dense<0xFF800000> : vector<2x8xf32>
    %222 = vector.multi_reduction <maximumf>, %221, %cst_66 [2] : vector<2x8x8xf32> to vector<2x8xf32>
    %223 = vector.shape_cast %222 : vector<2x8xf32> to vector<2x8x1xf32>
    %224 = vector.broadcast %223 : vector<2x8x1xf32> to vector<2x8x8xf32>
    %225 = arith.subf %221, %224 : vector<2x8x8xf32>
    %226 = math.exp %225 : vector<2x8x8xf32>
    %cst_67 = arith.constant dense<0.000000e+00> : vector<2x8xf32>
    %227 = vector.multi_reduction <add>, %226, %cst_67 [2] : vector<2x8x8xf32> to vector<2x8xf32>
    %228 = vector.shape_cast %227 : vector<2x8xf32> to vector<2x8x1xf32>
    %229 = vector.broadcast %228 : vector<2x8x1xf32> to vector<2x8x8xf32>
    %230 = arith.divf %226, %229 : vector<2x8x8xf32>
    "tpu.trace_start"() <{level = 10 : i32, message = "bqk,bkd->bqd"}> : () -> ()
    %cst_68 = arith.constant dense<0.000000e+00> : vector<2x8x8xf32>
    %231 = tpu.matmul %230, %218, %cst_68 {dimension_numbers = #tpu.dot_dimension_numbers<[2], [1], [1], [2], [0, 0, 0, 1, 1, 2], [0], [0]>} : vector<2x8x8xf32>, vector<2x8x8xf32>, vector<2x8x8xf32> -> vector<2x8x8xf32>
    "tpu.trace_stop"() : () -> ()
    %232 = vector.shape_cast %231 : vector<2x8x8xf32> to vector<16x8xf32>
    %233 = vector.extract_strided_slice %212 {offsets = [0, 8], sizes = [16, 8], strides = [1, 1]} : vector<16x96xf32> to vector<16x8xf32>
    %234 = vector.shape_cast %233 : vector<16x8xf32> to vector<2x8x8xf32>
    %235 = vector.extract_strided_slice %212 {offsets = [0, 40], sizes = [16, 8], strides = [1, 1]} : vector<16x96xf32> to vector<16x8xf32>
    %236 = vector.shape_cast %235 : vector<16x8xf32> to vector<2x8x8xf32>
    %237 = vector.extract_strided_slice %212 {offsets = [0, 72], sizes = [16, 8], strides = [1, 1]} : vector<16x96xf32> to vector<16x8xf32>
    %238 = vector.shape_cast %237 : vector<16x8xf32> to vector<2x8x8xf32>
    "tpu.trace_start"() <{level = 10 : i32, message = "bqd,bkd->bqk"}> : () -> ()
    %cst_69 = arith.constant dense<0.000000e+00> : vector<2x8x8xf32>
    %239 = tpu.matmul %234, %236, %cst_69 {dimension_numbers = #tpu.dot_dimension_numbers<[2], [2], [1], [1], [0, 0, 0, 1, 1, 1], [0], [0]>} : vector<2x8x8xf32>, vector<2x8x8xf32>, vector<2x8x8xf32> -> vector<2x8x8xf32>
    "tpu.trace_stop"() : () -> ()
    %240 = vector.broadcast %10 : vector<1x8x8xf32> to vector<2x8x8xf32>
    %241 = arith.addf %239, %240 : vector<2x8x8xf32>
    %cst_70 = arith.constant dense<0xFF800000> : vector<2x8xf32>
    %242 = vector.multi_reduction <maximumf>, %241, %cst_70 [2] : vector<2x8x8xf32> to vector<2x8xf32>
    %243 = vector.shape_cast %242 : vector<2x8xf32> to vector<2x8x1xf32>
    %244 = vector.broadcast %243 : vector<2x8x1xf32> to vector<2x8x8xf32>
    %245 = arith.subf %241, %244 : vector<2x8x8xf32>
    %246 = math.exp %245 : vector<2x8x8xf32>
    %cst_71 = arith.constant dense<0.000000e+00> : vector<2x8xf32>
    %247 = vector.multi_reduction <add>, %246, %cst_71 [2] : vector<2x8x8xf32> to vector<2x8xf32>
    %248 = vector.shape_cast %247 : vector<2x8xf32> to vector<2x8x1xf32>
    %249 = vector.broadcast %248 : vector<2x8x1xf32> to vector<2x8x8xf32>
    %250 = arith.divf %246, %249 : vector<2x8x8xf32>
    "tpu.trace_start"() <{level = 10 : i32, message = "bqk,bkd->bqd"}> : () -> ()
    %cst_72 = arith.constant dense<0.000000e+00> : vector<2x8x8xf32>
    %251 = tpu.matmul %250, %238, %cst_72 {dimension_numbers = #tpu.dot_dimension_numbers<[2], [1], [1], [2], [0, 0, 0, 1, 1, 2], [0], [0]>} : vector<2x8x8xf32>, vector<2x8x8xf32>, vector<2x8x8xf32> -> vector<2x8x8xf32>
    "tpu.trace_stop"() : () -> ()
    %252 = vector.shape_cast %251 : vector<2x8x8xf32> to vector<16x8xf32>
    %253 = vector.extract_strided_slice %212 {offsets = [0, 16], sizes = [16, 8], strides = [1, 1]} : vector<16x96xf32> to vector<16x8xf32>
    %254 = vector.shape_cast %253 : vector<16x8xf32> to vector<2x8x8xf32>
    %255 = vector.extract_strided_slice %212 {offsets = [0, 48], sizes = [16, 8], strides = [1, 1]} : vector<16x96xf32> to vector<16x8xf32>
    %256 = vector.shape_cast %255 : vector<16x8xf32> to vector<2x8x8xf32>
    %257 = vector.extract_strided_slice %212 {offsets = [0, 80], sizes = [16, 8], strides = [1, 1]} : vector<16x96xf32> to vector<16x8xf32>
    %258 = vector.shape_cast %257 : vector<16x8xf32> to vector<2x8x8xf32>
    "tpu.trace_start"() <{level = 10 : i32, message = "bqd,bkd->bqk"}> : () -> ()
    %cst_73 = arith.constant dense<0.000000e+00> : vector<2x8x8xf32>
    %259 = tpu.matmul %254, %256, %cst_73 {dimension_numbers = #tpu.dot_dimension_numbers<[2], [2], [1], [1], [0, 0, 0, 1, 1, 1], [0], [0]>} : vector<2x8x8xf32>, vector<2x8x8xf32>, vector<2x8x8xf32> -> vector<2x8x8xf32>
    "tpu.trace_stop"() : () -> ()
    %260 = vector.broadcast %10 : vector<1x8x8xf32> to vector<2x8x8xf32>
    %261 = arith.addf %259, %260 : vector<2x8x8xf32>
    %cst_74 = arith.constant dense<0xFF800000> : vector<2x8xf32>
    %262 = vector.multi_reduction <maximumf>, %261, %cst_74 [2] : vector<2x8x8xf32> to vector<2x8xf32>
    %263 = vector.shape_cast %262 : vector<2x8xf32> to vector<2x8x1xf32>
    %264 = vector.broadcast %263 : vector<2x8x1xf32> to vector<2x8x8xf32>
    %265 = arith.subf %261, %264 : vector<2x8x8xf32>
    %266 = math.exp %265 : vector<2x8x8xf32>
    %cst_75 = arith.constant dense<0.000000e+00> : vector<2x8xf32>
    %267 = vector.multi_reduction <add>, %266, %cst_75 [2] : vector<2x8x8xf32> to vector<2x8xf32>
    %268 = vector.shape_cast %267 : vector<2x8xf32> to vector<2x8x1xf32>
    %269 = vector.broadcast %268 : vector<2x8x1xf32> to vector<2x8x8xf32>
    %270 = arith.divf %266, %269 : vector<2x8x8xf32>
    "tpu.trace_start"() <{level = 10 : i32, message = "bqk,bkd->bqd"}> : () -> ()
    %cst_76 = arith.constant dense<0.000000e+00> : vector<2x8x8xf32>
    %271 = tpu.matmul %270, %258, %cst_76 {dimension_numbers = #tpu.dot_dimension_numbers<[2], [1], [1], [2], [0, 0, 0, 1, 1, 2], [0], [0]>} : vector<2x8x8xf32>, vector<2x8x8xf32>, vector<2x8x8xf32> -> vector<2x8x8xf32>
    "tpu.trace_stop"() : () -> ()
    %272 = vector.shape_cast %271 : vector<2x8x8xf32> to vector<16x8xf32>
    %273 = vector.extract_strided_slice %212 {offsets = [0, 24], sizes = [16, 8], strides = [1, 1]} : vector<16x96xf32> to vector<16x8xf32>
    %274 = vector.shape_cast %273 : vector<16x8xf32> to vector<2x8x8xf32>
    %275 = vector.extract_strided_slice %212 {offsets = [0, 56], sizes = [16, 8], strides = [1, 1]} : vector<16x96xf32> to vector<16x8xf32>
    %276 = vector.shape_cast %275 : vector<16x8xf32> to vector<2x8x8xf32>
    %277 = vector.extract_strided_slice %212 {offsets = [0, 88], sizes = [16, 8], strides = [1, 1]} : vector<16x96xf32> to vector<16x8xf32>
    %278 = vector.shape_cast %277 : vector<16x8xf32> to vector<2x8x8xf32>
    "tpu.trace_start"() <{level = 10 : i32, message = "bqd,bkd->bqk"}> : () -> ()
    %cst_77 = arith.constant dense<0.000000e+00> : vector<2x8x8xf32>
    %279 = tpu.matmul %274, %276, %cst_77 {dimension_numbers = #tpu.dot_dimension_numbers<[2], [2], [1], [1], [0, 0, 0, 1, 1, 1], [0], [0]>} : vector<2x8x8xf32>, vector<2x8x8xf32>, vector<2x8x8xf32> -> vector<2x8x8xf32>
    "tpu.trace_stop"() : () -> ()
    %280 = vector.broadcast %10 : vector<1x8x8xf32> to vector<2x8x8xf32>
    %281 = arith.addf %279, %280 : vector<2x8x8xf32>
    %cst_78 = arith.constant dense<0xFF800000> : vector<2x8xf32>
    %282 = vector.multi_reduction <maximumf>, %281, %cst_78 [2] : vector<2x8x8xf32> to vector<2x8xf32>
    %283 = vector.shape_cast %282 : vector<2x8xf32> to vector<2x8x1xf32>
    %284 = vector.broadcast %283 : vector<2x8x1xf32> to vector<2x8x8xf32>
    %285 = arith.subf %281, %284 : vector<2x8x8xf32>
    %286 = math.exp %285 : vector<2x8x8xf32>
    %cst_79 = arith.constant dense<0.000000e+00> : vector<2x8xf32>
    %287 = vector.multi_reduction <add>, %286, %cst_79 [2] : vector<2x8x8xf32> to vector<2x8xf32>
    %288 = vector.shape_cast %287 : vector<2x8xf32> to vector<2x8x1xf32>
    %289 = vector.broadcast %288 : vector<2x8x1xf32> to vector<2x8x8xf32>
    %290 = arith.divf %286, %289 : vector<2x8x8xf32>
    "tpu.trace_start"() <{level = 10 : i32, message = "bqk,bkd->bqd"}> : () -> ()
    %cst_80 = arith.constant dense<0.000000e+00> : vector<2x8x8xf32>
    %291 = tpu.matmul %290, %278, %cst_80 {dimension_numbers = #tpu.dot_dimension_numbers<[2], [1], [1], [2], [0, 0, 0, 1, 1, 2], [0], [0]>} : vector<2x8x8xf32>, vector<2x8x8xf32>, vector<2x8x8xf32> -> vector<2x8x8xf32>
    "tpu.trace_stop"() : () -> ()
    %292 = vector.shape_cast %291 : vector<2x8x8xf32> to vector<16x8xf32>
    %293 = tpu.concatenate %232, %252, %272, %292 in 1 : vector<16x8xf32>, vector<16x8xf32>, vector<16x8xf32>, vector<16x8xf32> -> vector<16x32xf32>
    %c1_81 = arith.constant 1 : index
    %c0_82 = arith.constant 0 : index
    %c0_83 = arith.constant 0 : index
    %294 = vector.load %arg5[%c1_81, %c0_82, %c0_83] : memref<2x32x32xf32, #tpu.memory_space<vmem>>, vector<1x32x32xf32>
    %295 = vector.shape_cast %294 : vector<1x32x32xf32> to vector<32x32xf32>
    %cst_84 = arith.constant dense<0.000000e+00> : vector<16x32xf32>
    %296 = tpu.matmul %293, %295, %cst_84 {dimension_numbers = #tpu.dot_dimension_numbers<[1], [0], [0], [1], [0, 0, 1, 1], [], []>} : vector<16x32xf32>, vector<32x32xf32>, vector<16x32xf32> -> vector<16x32xf32>
    %297 = arith.addf %175, %296 : vector<16x32xf32>
    %298 = vector.broadcast %182 : vector<1x32xf32> to vector<16x32xf32>
    %299 = arith.addf %297, %298 : vector<16x32xf32>
    %cst_85 = arith.constant dense<0.000000e+00> : vector<16xf32>
    %300 = vector.multi_reduction <add>, %299, %cst_85 [1] : vector<16x32xf32> to vector<16xf32>
    %301 = vector.shape_cast %300 : vector<16xf32> to vector<16x1xf32>
    %cst_86 = arith.constant 3.200000e+01 : f32
    %302 = vector.broadcast %cst_86 : f32 to vector<16x1xf32>
    %303 = arith.divf %301, %302 : vector<16x1xf32>
    %304 = vector.broadcast %303 : vector<16x1xf32> to vector<16x32xf32>
    %305 = arith.subf %299, %304 : vector<16x32xf32>
    %306 = arith.mulf %305, %305 : vector<16x32xf32>
    %cst_87 = arith.constant dense<0.000000e+00> : vector<16xf32>
    %307 = vector.multi_reduction <add>, %306, %cst_87 [1] : vector<16x32xf32> to vector<16xf32>
    %308 = vector.shape_cast %307 : vector<16xf32> to vector<16x1xf32>
    %cst_88 = arith.constant 3.200000e+01 : f32
    %309 = vector.broadcast %cst_88 : f32 to vector<16x1xf32>
    %310 = arith.divf %308, %309 : vector<16x1xf32>
    %311 = vector.broadcast %303 : vector<16x1xf32> to vector<16x32xf32>
    %312 = arith.subf %299, %311 : vector<16x32xf32>
    %cst_89 = arith.constant 9.99999974E-6 : f32
    %313 = vector.broadcast %cst_89 : f32 to vector<16x1xf32>
    %314 = arith.addf %310, %313 : vector<16x1xf32>
    %315 = math.rsqrt %314 : vector<16x1xf32>
    %316 = vector.broadcast %315 : vector<16x1xf32> to vector<16x32xf32>
    %317 = arith.mulf %312, %316 : vector<16x32xf32>
    %318 = vector.broadcast %180 : vector<1x32xf32> to vector<16x32xf32>
    %319 = arith.mulf %317, %318 : vector<16x32xf32>
    %320 = vector.broadcast %181 : vector<1x32xf32> to vector<16x32xf32>
    %321 = arith.addf %319, %320 : vector<16x32xf32>
    %c1_90 = arith.constant 1 : index
    %c0_91 = arith.constant 0 : index
    %c0_92 = arith.constant 0 : index
    %322 = vector.load %arg6[%c1_90, %c0_91, %c0_92] : memref<2x32x128xf32, #tpu.memory_space<vmem>>, vector<1x32x128xf32>
    %323 = vector.shape_cast %322 : vector<1x32x128xf32> to vector<32x128xf32>
    %cst_93 = arith.constant dense<0.000000e+00> : vector<16x128xf32>
    %324 = tpu.matmul %321, %323, %cst_93 {dimension_numbers = #tpu.dot_dimension_numbers<[1], [0], [0], [1], [0, 0, 1, 1], [], []>} : vector<16x32xf32>, vector<32x128xf32>, vector<16x128xf32> -> vector<16x128xf32>
    %325 = vector.broadcast %185 : vector<1x128xf32> to vector<16x128xf32>
    %326 = arith.addf %324, %325 : vector<16x128xf32>
    %cst_94 = arith.constant 1.702000e+00 : f32
    %327 = vector.broadcast %cst_94 : f32 to vector<16x128xf32>
    %328 = arith.mulf %327, %326 : vector<16x128xf32>
    %329 = arith.negf %328 : vector<16x128xf32>
    %330 = math.exp %329 : vector<16x128xf32>
    %cst_95 = arith.constant 1.000000e+00 : f32
    %331 = vector.broadcast %cst_95 : f32 to vector<16x128xf32>
    %332 = arith.addf %331, %330 : vector<16x128xf32>
    %333 = arith.divf %331, %332 : vector<16x128xf32>
    %334 = arith.mulf %326, %333 : vector<16x128xf32>
    %c1_96 = arith.constant 1 : index
    %c0_97 = arith.constant 0 : index
    %c0_98 = arith.constant 0 : index
    %335 = vector.load %arg7[%c1_96, %c0_97, %c0_98] : memref<2x128x32xf32, #tpu.memory_space<vmem>>, vector<1x128x32xf32>
    %336 = vector.shape_cast %335 : vector<1x128x32xf32> to vector<128x32xf32>
    %cst_99 = arith.constant dense<0.000000e+00> : vector<16x32xf32>
    %337 = tpu.matmul %334, %336, %cst_99 {dimension_numbers = #tpu.dot_dimension_numbers<[1], [0], [0], [1], [0, 0, 1, 1], [], []>} : vector<16x128xf32>, vector<128x32xf32>, vector<16x32xf32> -> vector<16x32xf32>
    %338 = arith.addf %299, %337 : vector<16x32xf32>
    %339 = vector.broadcast %183 : vector<1x32xf32> to vector<16x32xf32>
    %340 = arith.addf %338, %339 : vector<16x32xf32>
    %c0_100 = arith.constant 0 : index
    %c0_101 = arith.constant 0 : index
    %341 = vector.load %arg2[%c0_100, %c0_101] : memref<2x16xf32, #tpu.memory_space<vmem>>, vector<2x16xf32>
    %cst_102 = arith.constant dense<0.000000e+00> : vector<2x32xf32>
    %342 = tpu.matmul %341, %340, %cst_102 {dimension_numbers = #tpu.dot_dimension_numbers<[1], [0], [0], [1], [0, 0, 1, 1], [], []>} : vector<2x16xf32>, vector<16x32xf32>, vector<2x32xf32> -> vector<2x32xf32>
    %c0_103 = arith.constant 0 : index
    %c0_104 = arith.constant 0 : index
    %343 = vector.load %arg9[%c0_103, %c0_104] : memref<2x32xf32, #tpu.memory_space<vmem>>, vector<1x32xf32>
    %c1_105 = arith.constant 1 : index
    %c0_106 = arith.constant 0 : index
    %344 = vector.load %arg9[%c1_105, %c0_106] : memref<2x32xf32, #tpu.memory_space<vmem>>, vector<1x32xf32>
    %cst_107 = arith.constant dense<0.000000e+00> : vector<2xf32>
    %345 = vector.multi_reduction <add>, %342, %cst_107 [1] : vector<2x32xf32> to vector<2xf32>
    %346 = vector.shape_cast %345 : vector<2xf32> to vector<2x1xf32>
    %cst_108 = arith.constant 3.200000e+01 : f32
    %347 = vector.broadcast %cst_108 : f32 to vector<2x1xf32>
    %348 = arith.divf %346, %347 : vector<2x1xf32>
    %349 = vector.broadcast %348 : vector<2x1xf32> to vector<2x32xf32>
    %350 = arith.subf %342, %349 : vector<2x32xf32>
    %351 = arith.mulf %350, %350 : vector<2x32xf32>
    %cst_109 = arith.constant dense<0.000000e+00> : vector<2xf32>
    %352 = vector.multi_reduction <add>, %351, %cst_109 [1] : vector<2x32xf32> to vector<2xf32>
    %353 = vector.shape_cast %352 : vector<2xf32> to vector<2x1xf32>
    %cst_110 = arith.constant 3.200000e+01 : f32
    %354 = vector.broadcast %cst_110 : f32 to vector<2x1xf32>
    %355 = arith.divf %353, %354 : vector<2x1xf32>
    %356 = vector.broadcast %348 : vector<2x1xf32> to vector<2x32xf32>
    %357 = arith.subf %342, %356 : vector<2x32xf32>
    %cst_111 = arith.constant 9.99999974E-6 : f32
    %358 = vector.broadcast %cst_111 : f32 to vector<2x1xf32>
    %359 = arith.addf %355, %358 : vector<2x1xf32>
    %360 = math.rsqrt %359 : vector<2x1xf32>
    %361 = vector.broadcast %360 : vector<2x1xf32> to vector<2x32xf32>
    %362 = arith.mulf %357, %361 : vector<2x32xf32>
    %363 = vector.broadcast %343 : vector<1x32xf32> to vector<2x32xf32>
    %364 = arith.mulf %362, %363 : vector<2x32xf32>
    %365 = vector.broadcast %344 : vector<1x32xf32> to vector<2x32xf32>
    %366 = arith.addf %364, %365 : vector<2x32xf32>
    %c0_112 = arith.constant 0 : index
    %c0_113 = arith.constant 0 : index
    %367 = vector.load %arg10[%c0_112, %c0_113] : memref<2x32xf32, #tpu.memory_space<vmem>>, vector<2x32xf32>
    tpu.vector_store %arg10[%c0_112, %c0_113], %366 {strides = array<i32>} : memref<2x32xf32, #tpu.memory_space<vmem>>, vector<2x32xf32>,
    return
  }
}

</mosaic_0001>

<bundles_post_ra>
// kernel: tpu_custom_call.1
= control target key start
LH: loop header
LB: loop body
LE: loop exit
PB: predicated region body
PF: predicated region fallthrough
CT: control target
= control target key end

     0   :  { %vm48_vm0 = vcmask 523264   ;;  %s5367_s0 = inlined_call_operand.vmem [shape: f32[16,64], index: 0, kind: input, shape index: {}]   ;;  %s5368_s1 = inlined_call_operand.vmem [shape: f32[16,32], index: 1, kind: input, shape index: {}]   ;;  %s5369_s2 = inlined_call_operand.vmem [shape: f32[2,16], index: 2, kind: input, shape index: {}]   ;;  %s5370_s3 = inlined_call_operand.vmem [shape: f32[64,32], index: 3, kind: input, shape index: {}]   ;;  %s5371_s4 = inlined_call_operand.vmem [shape: f32[2,32,96], index: 4, kind: input, shape index: {}]   ;;  %s5372_s5 = inlined_call_operand.vmem [shape: f32[2,32,32], index: 5, kind: input, shape index: {}]   ;;  %s5373_s6 = inlined_call_operand.vmem [shape: f32[2,32,128], index: 6, kind: input, shape index: {}]   ;;  %s5374_s7 = inlined_call_operand.vmem [shape: f32[2,128,32], index: 7, kind: input, shape index: {}]   ;;  %s5375_s8 = inlined_call_operand.vmem [shape: f32[2,8,128], index: 8, kind: input, shape index: {}]   ;;  %s5376_s9 = inlined_call_operand.vmem [shape: f32[2,32], index: 9, kind: input, shape index: {}]   ;;  %s5377_s10 = inlined_call_operand.hbm [shape: f32[2,32], index: 10, kind: output, shape index: {}]  }
   0x1   :  { %v45_v0 = vld [vmem:[%s5370_s3 + $0x38] sm:$0xff]  ;;  %v44_v1 = vld [vmem:[%s5370_s3 + $0x30] sm:$0xff]  ;;  %v43_v2 = vld [vmem:[%s5370_s3 + $0x28] sm:$0xff] }
   0x2   :  { %4130 = vmatprep.subr.mxu1 %v45_v0  ;;  %v36_v3 = vld [vmem:[%s5367_s0] sm:$0xff] }
   0x3   :  { %4131 = vmatpush3.msra.mxu1 %v45_v0  ;;  %4146 = vmatprep.mubr.msk.f32.mxu1 %vm48_vm0, %v36_v3 }
   0x4   :  { %4132 = vmatprep.subr.mxu1 %v44_v1 }
   0x5   :  { %15 = vsyncpa [#allocation3], 0  ;;  %4133 = vmatpush3.msra.mxu1 %v44_v1  ;;  %v42_v4 = vld [vmem:[%s5370_s3 + $0x20] sm:$0xff]  ;;  %v41_v5 = vld [vmem:[%s5370_s3 + $0x18] sm:$0xff]  ;;  %vm137_vm1 = vcmask 261120   ;;  %v4589_v30 = vmov 0.0   ;;  %v130_v38 = vlaneseq }
   0x6   :  { %4134 = vmatprep.subr.mxu1 %v43_v2  ;;  %v40_v6 = vld [vmem:[%s5370_s3 + $0x10] sm:$0xff]  ;;  %v39_v7 = vld [vmem:[%s5370_s3 + $0x8] sm:$0xff]  ;;  %v38_v8 = vld [vmem:[%s5370_s3] sm:$0xff]  ;;  %4170 = vmatprep.subr.mxu0 %v4589_v30  ;;  %vm4590_vm2 = vmmov 0   ;;  %s4591_s24 = smov 96   ;;  %vm269_vm3 = vcmask 64512  }
   0x7   :  { %4135 = vmatpush3.msra.mxu1 %v43_v2  ;;  %v37_v9 = vld [vmem:[%s5367_s0 + $0x8] sm:$0xff]  ;;  %v46_v11 = vld [vmem:[%s5368_s1] sm:$0xff]  ;;  %v180_v28 = vld [vmem:[%s5371_s4 + $0x18] sm:$0xff]  ;;  %v4725_v40 = vshrl.u32 %v130_v38, 7  ;;  %4172 = vmatprep.mubr.msk.f32.mxu0 %vm4590_vm2, %v4589_v30  ;;  %v133_v62 = vand.u32 127, %v130_v38  ;;  %s4592_s25 = smov 64  }
   0x8   :  { %4136 = vmatprep.subr.mxu1 %v42_v4  ;;  %v47_v12 = vld [vmem:[%s5368_s1 + $0x8] sm:$0xff]  ;;  %v179_v29 = vld [vmem:[%s5371_s4 + $0x10] sm:$0xff]  ;;  %v177_v32 = vld [vmem:[%s5371_s4] sm:$0xff]  ;;  %s4593_s26 = smov 88   ;;  %s4594_s27 = smov 120   ;;  %vm1611_vm5 = vcmask 130048  }
   0x9   :  { %4137 = vmatpush3.msra.mxu1 %v42_v4  ;;  %v178_v31 = vld [vmem:[%s5371_s4 + $0x8] sm:$0xff]  ;;  %v167_v41 = vsub.s32 0, %v4725_v40  ;;  %v4731_v42 = vld [vmem:[%s5375_s8] sm:$0xff]  ;;  %v173_v43 = vsub.s32 1, %v4725_v40  ;;  %v183_v54 = vsub.s32 6, %v4725_v40  ;;  %vm134_vm4 = vcmp.gt.s32.totalorder %v133_v62, %v4725_v40  ;;  %s4595_s28 = smov 56  }
   0xa   :  { %4138 = vmatprep.subr.mxu1 %v41_v5  ;;  %v4772_v63 = vsel %vm134_vm4, -inf, %v4589_v30  ;;  %s4596_s29 = smov 80   ;;  %s4597_s30 = smov 112   ;;  %vm1614_vm6 = vcmask 195584   ;;  %vm3844_vm7 = vcmask 254976  }
   0xb   :  { %4139 = vmatpush3.msra.mxu1 %v41_v5  ;;  %v168_v44 = vrot.slane %v4731_v42, %v167_v41  ;;  %v174_v47 = vrot.slane %v4731_v42, %v173_v43  ;;  %v184_v55 = vrot.slane %v4731_v42, %v183_v54  ;;  %s4598_s11 = smov 48   ;;  %s4599_s12 = smov 72  }
   0xc   :  { %4140 = vmatprep.subr.mxu1 %v40_v6  ;;  %s4600_s13 = smov 104   ;;  %s4601_s14 = smov 40  }
   0xd   :  { %4141 = vmatpush3.msra.mxu1 %v40_v6  ;;  %s4602_s15 = smov 8   ;;  %s4603_s16 = smov 16  }
   0xe   :  { %4142 = vmatprep.subr.mxu1 %v39_v7  ;;  %s4604_s20 = smov 24   ;;  %s4605_s3 = smov [#allocation2]  }
   0xf   :  { %4143 = vmatpush3.msra.mxu1 %v39_v7  ;;  %s3875_s17 = sshll.u32 %s4605_s3, 4  ;;  %s3876_s17 = int_to_ptr.vmem [resolvable:$true] %s3875_s17 }
  0x10   :  { %4144 = vmatprep.subr.mxu1 %v38_v8  ;;  %p4572_p1 = scmp.lt.s32.totalorder %s3876_s17, %s3876_s17 }
  0x11   :  { %4145 = vmatpush3.msra.mxu1 %v38_v8 }
  0x12   :  { %4147 = vmatmul.mubr.msk.f32.vlgmr.msra.gmra.mxu1 %vm48_vm0, %v37_v9  ;;  %4149 = vmatprep.subr.mxu1 %v180_v28 }
  0x13   :  { %4150 = vmatpush3.msra.mxu1 %v180_v28 }
  0x14   :  { %4151 = vmatprep.subr.mxu1 %v179_v29 }
  0x15   :  { %4152 = vmatpush3.msra.mxu1 %v179_v29 }
  0x16   :  { %4153 = vmatprep.subr.mxu1 %v178_v31 }
  0x17   :  { %4154 = vmatpush3.msra.mxu1 %v178_v31 }
  0x18   :  { %4155 = vmatprep.subr.mxu1 %v177_v32 }
  0x19   :  { %4156 = vmatpush3.msra.mxu1 %v177_v32 }
  0x1a   :  { %4160 = vmatprep.subr.mxu1 %v4589_v30 }
  0xd2   :  { %v4148_v10 = vpop.f32.mrf.mxu1 }
  0xd3   :  { %v4701_v15 = vadd.f32 %v4148_v10, %v47_v12 }
  0xd4   :  { %v121_v13 = vpop.f32.mrf.mxu1 }
  0xd5   :  { %v4699_v14 = vadd.f32 %v121_v13, %v46_v11  ;;  %v141_v17 = vsel %vm137_vm1, %v4701_v15, 0.0 }
  0xd7   :  { %v138_v16 = vsel %vm137_vm1, %v4699_v14, 0.0 }
  0xd8   :  { %139 = vadd.xlane.f32.xlu0 %v138_v16 }
  0xdc   :  { %142 = vadd.xlane.f32.xlu0 %v141_v17 }
 0x161   :  { %v140_v18 = vpop.xlane.xlu0 %139 }
 0x162   :  { %v145_v19 = vmul.f32 0.03125, %v140_v18 }
 0x164   :  { %v147_v20 = vsub.f32 %v4699_v14, %v145_v19 }
 0x165   :  { %v143_v21 = vpop.xlane.xlu0 %142 }
 0x166   :  { %v146_v22 = vmul.f32 0.03125, %v143_v21  ;;  %v149_v23 = vmul.f32 %v147_v20, %v147_v20 }
 0x168   :  { %v148_v24 = vsub.f32 %v4701_v15, %v146_v22  ;;  %v151_v25 = vsel %vm137_vm1, %v149_v23, 0.0 }
 0x169   :  { %152 = vadd.xlane.f32.xlu1 %v151_v25 }
 0x16a   :  { %v150_v26 = vmul.f32 %v148_v24, %v148_v24 }
 0x16c   :  { %v154_v27 = vsel %vm137_vm1, %v150_v26, 0.0 }
 0x16d   :  { %155 = vadd.xlane.f32.xlu1 %v154_v27 }
 0x1f2   :  { %v153_v33 = vpop.xlane.xlu1 %152 }
 0x1f3   :  { %v157_v34 = vmul.f32 0.03125, %v153_v33 }
 0x1f5   :  { %v159_v35 = vadd.f32 1e-05, %v157_v34 }
 0x1f6   :  { %v156_v36 = vpop.xlane.xlu1 %155 }
 0x1f7   :  { %4469 = vrsqrt.f32 %v159_v35  ;;  %v158_v37 = vmul.f32 0.03125, %v156_v36 }
 0x1f9   :  { %v160_v39 = vadd.f32 1e-05, %v158_v37 }
 0x1fb   :  { %4471 = vrsqrt.f32 %v160_v39 }
 0x204   :  { %v4470_v45 = vpop.eup %4469 }
 0x205   :  { %v163_v46 = vmul.f32 %v4470_v45, %v147_v20 }
 0x207   :  { %v169_v48 = vmul.f32 %v168_v44, %v163_v46 }
 0x208   :  { %v4472_v49 = vpop.eup %4471 }
 0x209   :  { %v164_v50 = vmul.f32 %v4472_v49, %v148_v24  ;;  %v175_v51 = vadd.f32 %v174_v47, %v169_v48 }
 0x20b   :  { %v170_v52 = vmul.f32 %v168_v44, %v164_v50  ;;  %4157 = vmatprep.mubr.msk.f32.mxu1 %vm137_vm1, %v175_v51 }
 0x20d   :  { %v176_v53 = vadd.f32 %v174_v47, %v170_v52 }
 0x20f   :  { %4158 = vmatmul.mubr.msk.f32.vlgmr.msra.gmra.mxu1 %vm137_vm1, %v176_v53 }
 0x210   :  { %4162 = vmatprep.mubr.msk.f32.mxu1 %vm4590_vm2, %v4589_v30 }
 0x2cf   :  { %v4159_v56 = vpop.f32.mrf.mxu1 }
 0x2d0   :  { %v4750_v57 = vadd.f32 %v4159_v56, %v184_v55 }
 0x2d1   :  { %v257_v58 = vpop.f32.mrf.mxu1 }
 0x2d2   :  { %v4752_v59 = vadd.f32 %v257_v58, %v184_v55  ;;  %345 = vrot.lane.b32.xlu1 %v4750_v57, %s4591_s24 }
 0x2d4   :  { %267 = vrot.lane.b32.xlu0 %v4752_v59, %s4591_s24 }
 0x344   :  { %v346_v61 = vpop.permute.xlu1 %345 }
 0x346   :  { %v268_v60 = vpop.permute.xlu0 %267 }
 0x347   :  { %4161 = vmatpush3.xpose.msk.msra.mxu1 %vm269_vm3, %v268_v60 }
 0x348   :  { %4165 = vmatprep.subr.mxu1 %v4589_v30 }
 0x34a   :  { %4163 = vmatmul.mubr.msk.f32.vlgmr.msra.gmra.mxu1 %vm269_vm3, %v4752_v59 }
 0x34b   :  { %4166 = vmatpush3.xpose.msk.msra.mxu1 %vm269_vm3, %v346_v61  ;;  %4167 = vmatprep.mubr.msk.f32.mxu1 %vm4590_vm2, %v4589_v30 }
 0x34c   :  { %4185 = vmatprep.subr.mxu1 %v4589_v30 }
 0x34e   :  { %4168 = vmatmul.mubr.msk.f32.vlgmr.msra.gmra.mxu1 %vm269_vm3, %v4750_v57 }
 0x34f   :  { %4187 = vmatprep.mubr.msk.f32.mxu1 %vm4590_vm2, %v4589_v30 }
 0x40a   :  { %v340_v0 = vpop.f32.mrf.mxu1 }
 0x40b   :  { %v341_v1 = vadd.f32 %v340_v0, %v4772_v63 }
 0x40c   :  { %v4164_v2 = vpop.f32.mrf.mxu1 }
 0x40d   :  { %v421_v3 = vsel %vm269_vm3, %v341_v1, -inf }
 0x40e   :  { %422 = vmax.xlane.f32.xlu1 %v421_v3  ;;  %v417_v4 = vpop.f32.mrf.mxu1 }
 0x40f   :  { %v418_v5 = vadd.f32 %v417_v4, %v4772_v63 }
 0x410   :  { %v4169_v6 = vpop.f32.mrf.mxu1 }
 0x411   :  { %v424_v7 = vsel %vm269_vm3, %v418_v5, -inf }
 0x412   :  { %425 = vmax.xlane.f32.xlu0 %v424_v7 }
 0x41f   :  { %519 = vrot.lane.b32.xlu1 %v4750_v57, %s4592_s25 }
 0x423   :  { %597 = vrot.lane.b32.xlu1 %v4752_v59, %s4593_s26 }
 0x427   :  { %675 = vrot.lane.b32.xlu1 %v4750_v57, %s4593_s26 }
 0x497   :  { %v423_v8 = vpop.xlane.xlu1 %422 }
 0x498   :  { %v427_v9 = vsub.f32 %v341_v1, %v423_v8 }
 0x49a   :  { %v429_v10 = vmul.f32 1.442695, %v427_v9 }
 0x49b   :  { %v520_v11 = vpop.permute.xlu1 %519  ;;  %v426_v12 = vpop.xlane.xlu0 %425 }
 0x49c   :  { %4473 = vpow2.f32 %v429_v10  ;;  %v428_v13 = vsub.f32 %v418_v5, %v426_v12 }
 0x49e   :  { %v431_v16 = vmul.f32 1.442695, %v428_v13 }
 0x49f   :  { %v598_v17 = vpop.permute.xlu1 %597 }
 0x4a0   :  { %4475 = vpow2.f32 %v431_v16 }
 0x4a3   :  { %v676_v18 = vpop.permute.xlu1 %675 }
 0x4a4   :  { %4186 = vmatpush3.xpose.msk.msra.mxu1 %vm269_vm3, %v676_v18 }
 0x4a5   :  { %4195 = vmatprep.subr.mxu1 %v4589_v30 }
 0x4a9   :  { %v4474_v19 = vpop.eup %4473 }
 0x4aa   :  { %v433_v20 = vsel %vm269_vm3, %v4474_v19, 0.0 }
 0x4ab   :  { %434 = vadd.xlane.f32.xlu0 %v433_v20 }
 0x4ad   :  { %v4476_v21 = vpop.eup %4475 }
 0x4ae   :  { %v436_v22 = vsel %vm269_vm3, %v4476_v21, 0.0 }
 0x4af   :  { %437 = vadd.xlane.f32.xlu1 %v436_v22 }
 0x4c0   :  { %673 = vrot.lane.b32.xlu1 %v4750_v57, %s4594_s27 }
 0x4c1   :  { %443 = vrot.lane.b32.xlu0 %v4752_v59, %s4592_s25 }
 0x4c5   :  { %595 = vrot.lane.b32.xlu0 %v4752_v59, %s4594_s27 }
 0x534   :  { %v435_v23 = vpop.xlane.xlu0 %434 }
 0x535   :  { %4477 = vrcp.f32 %v435_v23 }
 0x538   :  { %v438_v24 = vpop.xlane.xlu1 %437  ;;  %v444_v25 = vpop.permute.xlu0 %443 }
 0x539   :  { %4479 = vrcp.f32 %v438_v24  ;;  %4171 = vmatpush3.msra.mxu0 %v444_v25 }
 0x53a   :  { %4175 = vmatprep.subr.mxu0 %v4589_v30 }
 0x53c   :  { %v674_v26 = vpop.permute.xlu1 %673  ;;  %v596_v32 = vpop.permute.xlu0 %595 }
 0x53d   :  { %4188 = vmatmul.mubr.msk.f32.vlgmr.msra.gmra.mxu1 %vm269_vm3, %v674_v26 }
 0x53e   :  { %4197 = vmatprep.mubr.msk.f32.mxu1 %vm4590_vm2, %v4589_v30 }
 0x542   :  { %v4478_v27 = vpop.eup %4477 }
 0x543   :  { %v440_v28 = vmul.f32 %v4478_v27, %v4474_v19 }
 0x545   :  { %4173 = vmatmul.mubr.msk.f32.vlgmr.msra.gmra.mxu0 %vm269_vm3, %v440_v28 }
 0x546   :  { %v4480_v29 = vpop.eup %4479  ;;  %4176 = vmatpush3.msra.mxu0 %v520_v11  ;;  %4177 = vmatprep.mubr.msk.f32.mxu0 %vm4590_vm2, %v4589_v30 }
 0x547   :  { %4180 = vmatprep.subr.mxu0 %v4589_v30  ;;  %v442_v31 = vmul.f32 %v4480_v29, %v4476_v21 }
 0x549   :  { %4178 = vmatmul.mubr.msk.f32.vlgmr.msra.gmra.mxu0 %vm269_vm3, %v442_v31 }
 0x54a   :  { %4181 = vmatpush3.xpose.msk.msra.mxu0 %vm269_vm3, %v598_v17  ;;  %4182 = vmatprep.mubr.msk.f32.mxu0 %vm4590_vm2, %v4589_v30 }
 0x54b   :  { %4190 = vmatprep.subr.mxu0 %v4589_v30 }
 0x54d   :  { %4183 = vmatmul.mubr.msk.f32.vlgmr.msra.gmra.mxu0 %vm269_vm3, %v596_v32 }
 0x54e   :  { %4192 = vmatprep.mubr.msk.f32.mxu0 %vm4590_vm2, %v4589_v30 }
 0x5fd   :  { %v747_v33 = vpop.f32.mrf.mxu1 }
 0x5fe   :  { %v748_v34 = vadd.f32 %v747_v33, %v4772_v63 }
 0x5ff   :  { %v4189_v35 = vpop.f32.mrf.mxu1 }
 0x600   :  { %v754_v36 = vsel %vm269_vm3, %v748_v34, -inf }
 0x601   :  { %755 = vmax.xlane.f32.xlu1 %v754_v36 }
 0x605   :  { %v4812_v37 = vpop.f32.mrf.mxu0 }
 0x607   :  { %v4174_v38 = vpop.f32.mrf.mxu0 }
 0x609   :  { %v4814_v39 = vpop.f32.mrf.mxu0 }
 0x60b   :  { %v4179_v44 = vpop.f32.mrf.mxu0 }
 0x60d   :  { %v669_v45 = vpop.f32.mrf.mxu0 }
 0x60e   :  { %v670_v46 = vadd.f32 %v669_v45, %v4772_v63 }
 0x60f   :  { %v4184_v47 = vpop.f32.mrf.mxu0 }
 0x610   :  { %v751_v48 = vsel %vm269_vm3, %v670_v46, -inf }
 0x611   :  { %752 = vmax.xlane.f32.xlu0 %v751_v48 }
 0x612   :  { %849 = vrot.lane.b32.xlu1 %v4750_v57, %s4595_s28 }
 0x616   :  { %927 = vrot.lane.b32.xlu1 %v4752_v59, %s4596_s29 }
 0x61a   :  { %1005 = vrot.lane.b32.xlu1 %v4750_v57, %s4596_s29 }
 0x61e   :  { %1003 = vrot.lane.b32.xlu1 %v4750_v57, %s4597_s30 }
 0x68a   :  { %v756_v49 = vpop.xlane.xlu1 %755 }
 0x68b   :  { %v758_v50 = vsub.f32 %v748_v34, %v756_v49 }
 0x68d   :  { %v761_v51 = vmul.f32 1.442695, %v758_v50 }
 0x68e   :  { %v850_v52 = vpop.permute.xlu1 %849 }
 0x68f   :  { %4481 = vpow2.f32 %v761_v51  ;;  %4196 = vmatpush3.msra.mxu1 %v850_v52 }
 0x690   :  { %4205 = vmatprep.subr.mxu1 %v4589_v30 }
 0x692   :  { %v928_v1 = vpop.permute.xlu1 %927 }
 0x696   :  { %v1006_v3 = vpop.permute.xlu1 %1005 }
 0x69a   :  { %v753_v53 = vpop.xlane.xlu0 %752  ;;  %v1004_v6 = vpop.permute.xlu1 %1003 }
 0x69b   :  { %v757_v55 = vsub.f32 %v670_v46, %v753_v53 }
 0x69c   :  { %v4482_v56 = vpop.eup %4481 }
 0x69d   :  { %v759_v58 = vmul.f32 1.442695, %v757_v55  ;;  %v766_v60 = vsel %vm269_vm3, %v4482_v56, 0.0 }
 0x69e   :  { %767 = vadd.xlane.f32.xlu0 %v766_v60 }
 0x69f   :  { %4483 = vpow2.f32 %v759_v58 }
 0x6ac   :  { %v4484_v61 = vpop.eup %4483 }
 0x6ad   :  { %v763_v62 = vsel %vm269_vm3, %v4484_v61, 0.0 }
 0x6ae   :  { %764 = vadd.xlane.f32.xlu0 %v763_v62 }
 0x6c4   :  { %773 = vrot.lane.b32.xlu0 %v4752_v59, %s4595_s28 }
 0x6c8   :  { %925 = vrot.lane.b32.xlu0 %v4752_v59, %s4597_s30 }
 0x727   :  { %v768_v0 = vpop.xlane.xlu0 %767 }
 0x728   :  { %4485 = vrcp.f32 %v768_v0 }
 0x735   :  { %v4486_v2 = vpop.eup %4485 }
 0x736   :  { %v772_v4 = vmul.f32 %v4486_v2, %v4482_v56 }
 0x737   :  { %v765_v5 = vpop.xlane.xlu0 %764 }
 0x738   :  { %4487 = vrcp.f32 %v765_v5  ;;  %4198 = vmatmul.mubr.msk.f32.vlgmr.msra.gmra.mxu1 %vm269_vm3, %v772_v4 }
 0x739   :  { %4206 = vmatpush3.xpose.msk.msra.mxu1 %vm269_vm3, %v1006_v3  ;;  %4207 = vmatprep.mubr.msk.f32.mxu1 %vm4590_vm2, %v4589_v30 }
 0x73a   :  { %4215 = vmatprep.subr.mxu1 %v4589_v30 }
 0x73b   :  { %v774_v7 = vpop.permute.xlu0 %773 }
 0x73c   :  { %4191 = vmatpush3.msra.mxu0 %v774_v7  ;;  %4208 = vmatmul.mubr.msk.f32.vlgmr.msra.gmra.mxu1 %vm269_vm3, %v1004_v6 }
 0x73d   :  { %4200 = vmatprep.subr.mxu0 %v4589_v30  ;;  %4217 = vmatprep.mubr.msk.f32.mxu1 %vm4590_vm2, %v4589_v30 }
 0x73f   :  { %v926_v10 = vpop.permute.xlu0 %925 }
 0x745   :  { %v4488_v8 = vpop.eup %4487 }
 0x746   :  { %v770_v9 = vmul.f32 %v4488_v8, %v4484_v61 }
 0x748   :  { %4193 = vmatmul.mubr.msk.f32.vlgmr.msra.gmra.mxu0 %vm269_vm3, %v770_v9 }
 0x749   :  { %4201 = vmatpush3.xpose.msk.msra.mxu0 %vm269_vm3, %v928_v1  ;;  %4202 = vmatprep.mubr.msk.f32.mxu0 %vm4590_vm2, %v4589_v30 }
 0x74a   :  { %4210 = vmatprep.subr.mxu0 %v4589_v30 }
 0x74c   :  { %4203 = vmatmul.mubr.msk.f32.vlgmr.msra.gmra.mxu0 %vm269_vm3, %v926_v10 }
 0x74d   :  { %4212 = vmatprep.mubr.msk.f32.mxu0 %vm4590_vm2, %v4589_v30 }
 0x7f8   :  { %v4850_v11 = vpop.f32.mrf.mxu1 }
 0x7fa   :  { %v4199_v12 = vpop.f32.mrf.mxu1 }
 0x7fc   :  { %v1077_v13 = vpop.f32.mrf.mxu1 }
 0x7fd   :  { %v1078_v16 = vadd.f32 %v1077_v13, %v4772_v63 }
 0x7fe   :  { %v4209_v17 = vpop.f32.mrf.mxu1 }
 0x7ff   :  { %v1084_v18 = vsel %vm269_vm3, %v1078_v16, -inf }
 0x800   :  { %1085 = vmax.xlane.f32.xlu1 %v1084_v18 }
 0x808   :  { %v4854_v19 = vpop.f32.mrf.mxu0 }
 0x80a   :  { %v4194_v20 = vpop.f32.mrf.mxu0 }
 0x80c   :  { %v999_v21 = vpop.f32.mrf.mxu0 }
 0x80d   :  { %v1000_v22 = vadd.f32 %v999_v21, %v4772_v63 }
 0x80e   :  { %v4204_v23 = vpop.f32.mrf.mxu0 }
 0x80f   :  { %v1081_v24 = vsel %vm269_vm3, %v1000_v22, -inf }
 0x810   :  { %1082 = vmax.xlane.f32.xlu0 %v1081_v24 }
 0x811   :  { %1179 = vrot.lane.b32.xlu1 %v4750_v57, %s4598_s11 }
 0x815   :  { %1257 = vrot.lane.b32.xlu1 %v4752_v59, %s4599_s12 }
 0x819   :  { %1335 = vrot.lane.b32.xlu1 %v4750_v57, %s4599_s12 }
 0x81d   :  { %1333 = vrot.lane.b32.xlu1 %v4750_v57, %s4600_s13 }
 0x889   :  { %v1086_v25 = vpop.xlane.xlu1 %1085 }
 0x88a   :  { %v1088_v26 = vsub.f32 %v1078_v16, %v1086_v25  ;;  %v1619_v25 = vld [vmem:[%s5372_s5 + $0x10] sm:$0xff] }
 0x88c   :  { %v1091_v27 = vmul.f32 1.442695, %v1088_v26  ;;  %v1618_v26 = vld [vmem:[%s5372_s5 + $0x8] sm:$0xff] }
 0x88d   :  { %v1180_v28 = vpop.permute.xlu1 %1179 }
 0x88e   :  { %4489 = vpow2.f32 %v1091_v27  ;;  %4216 = vmatpush3.msra.mxu1 %v1180_v28 }
 0x88f   :  { %4225 = vmatprep.subr.mxu1 %v4589_v30 }
 0x891   :  { %v1258_v44 = vpop.permute.xlu1 %1257 }
 0x895   :  { %v1336_v46 = vpop.permute.xlu1 %1335 }
 0x899   :  { %v1083_v29 = vpop.xlane.xlu0 %1082  ;;  %v1334_v49 = vpop.permute.xlu1 %1333 }
 0x89a   :  { %v1087_v31 = vsub.f32 %v1000_v22, %v1083_v29  ;;  %v1617_v29 = vld [vmem:[%s5372_s5] sm:$0xff] }
 0x89b   :  { %v4490_v32 = vpop.eup %4489 }
 0x89c   :  { %v1089_v33 = vmul.f32 1.442695, %v1087_v31  ;;  %v1096_v34 = vsel %vm269_vm3, %v4490_v32, 0.0 }
 0x89d   :  { %1097 = vadd.xlane.f32.xlu0 %v1096_v34 }
 0x89e   :  { %4491 = vpow2.f32 %v1089_v33 }
 0x8ab   :  { %v4492_v35 = vpop.eup %4491 }
 0x8ac   :  { %v1093_v36 = vsel %vm269_vm3, %v4492_v35, 0.0 }
 0x8ad   :  { %1094 = vadd.xlane.f32.xlu0 %v1093_v36 }
 0x8c3   :  { %1103 = vrot.lane.b32.xlu0 %v4752_v59, %s4598_s11 }
 0x8c7   :  { %1255 = vrot.lane.b32.xlu0 %v4752_v59, %s4600_s13 }
 0x926   :  { %v1098_v38 = vpop.xlane.xlu0 %1097 }
 0x927   :  { %4493 = vrcp.f32 %v1098_v38 }
 0x934   :  { %v4494_v45 = vpop.eup %4493 }
 0x935   :  { %v1102_v47 = vmul.f32 %v4494_v45, %v4490_v32 }
 0x936   :  { %v1095_v48 = vpop.xlane.xlu0 %1094 }
 0x937   :  { %4495 = vrcp.f32 %v1095_v48  ;;  %4218 = vmatmul.mubr.msk.f32.vlgmr.msra.gmra.mxu1 %vm269_vm3, %v1102_v47 }
 0x938   :  { %4226 = vmatpush3.xpose.msk.msra.mxu1 %vm269_vm3, %v1336_v46  ;;  %4227 = vmatprep.mubr.msk.f32.mxu1 %vm4590_vm2, %v4589_v30 }
 0x939   :  { %4235 = vmatprep.subr.mxu1 %v4589_v30 }
 0x93a   :  { %v1104_v50 = vpop.permute.xlu0 %1103 }
 0x93b   :  { %4211 = vmatpush3.msra.mxu0 %v1104_v50  ;;  %4228 = vmatmul.mubr.msk.f32.vlgmr.msra.gmra.mxu1 %vm269_vm3, %v1334_v49 }
 0x93c   :  { %4220 = vmatprep.subr.mxu0 %v4589_v30  ;;  %4237 = vmatprep.mubr.msk.f32.mxu1 %vm4590_vm2, %v4589_v30 }
 0x93e   :  { %v1256_v53 = vpop.permute.xlu0 %1255 }
 0x944   :  { %v4496_v51 = vpop.eup %4495 }
 0x945   :  { %v1100_v52 = vmul.f32 %v4496_v51, %v4492_v35 }
 0x947   :  { %4213 = vmatmul.mubr.msk.f32.vlgmr.msra.gmra.mxu0 %vm269_vm3, %v1100_v52 }
 0x948   :  { %4221 = vmatpush3.xpose.msk.msra.mxu0 %vm269_vm3, %v1258_v44  ;;  %4222 = vmatprep.mubr.msk.f32.mxu0 %vm4590_vm2, %v4589_v30 }
 0x949   :  { %4230 = vmatprep.subr.mxu0 %v4589_v30 }
 0x94b   :  { %4223 = vmatmul.mubr.msk.f32.vlgmr.msra.gmra.mxu0 %vm269_vm3, %v1256_v53 }
 0x94c   :  { %4232 = vmatprep.mubr.msk.f32.mxu0 %vm4590_vm2, %v4589_v30 }
 0x9f7   :  { %v1251_v55 = vpop.f32.mrf.mxu1 }
 0x9f9   :  { %v4219_v56 = vpop.f32.mrf.mxu1 }
 0x9fb   :  { %v1407_v58 = vpop.f32.mrf.mxu1 }
 0x9fc   :  { %v1408_v60 = vadd.f32 %v1407_v58, %v4772_v63 }
 0x9fd   :  { %v4229_v61 = vpop.f32.mrf.mxu1 }
 0x9fe   :  { %v1414_v62 = vsel %vm269_vm3, %v1408_v60, -inf }
 0x9ff   :  { %1415 = vmax.xlane.f32.xlu1 %v1414_v62 }
 0xa07   :  { %v1175_v0 = vpop.f32.mrf.mxu0 }
 0xa09   :  { %v4214_v1 = vpop.f32.mrf.mxu0 }
 0xa0b   :  { %v1329_v2 = vpop.f32.mrf.mxu0 }
 0xa0c   :  { %v1330_v3 = vadd.f32 %v1329_v2, %v4772_v63 }
 0xa0d   :  { %v4224_v4 = vpop.f32.mrf.mxu0 }
 0xa0e   :  { %v1411_v5 = vsel %vm269_vm3, %v1330_v3, -inf }
 0xa0f   :  { %1412 = vmax.xlane.f32.xlu0 %v1411_v5 }
 0xa10   :  { %1509 = vrot.lane.b32.xlu1 %v4750_v57, %s4601_s14 }
 0xa14   :  { %1587 = vrot.lane.b32.xlu1 %v4854_v19, %s4602_s15 }
 0xa18   :  { %1589 = vrot.lane.b32.xlu1 %v4850_v11, %s4602_s15 }
 0xa1c   :  { %1597 = vrot.lane.b32.xlu1 %v1251_v55, %s4603_s16 }
 0xa88   :  { %v1416_v6 = vpop.xlane.xlu1 %1415 }
 0xa89   :  { %v1418_v7 = vsub.f32 %v1408_v60, %v1416_v6 }
 0xa8b   :  { %v1421_v8 = vmul.f32 1.442695, %v1418_v7  ;;  %v1751_v7 = vld [vmem:[%s5373_s6 + $0x18] sm:$0xff] }
 0xa8c   :  { %v1510_v9 = vpop.permute.xlu1 %1509 }
 0xa8d   :  { %4497 = vpow2.f32 %v1421_v8  ;;  %4236 = vmatpush3.msra.mxu1 %v1510_v9  ;;  %v1750_v8 = vld [vmem:[%s5373_s6 + $0x10] sm:$0xff]  ;;  %v1749_v9 = vld [vmem:[%s5373_s6 + $0x8] sm:$0xff] }
 0xa8e   :  { %4251 = vmatprep.subr.mxu1 %v1751_v7 }
 0xa90   :  { %v1588_v33 = vpop.permute.xlu1 %1587 }
 0xa91   :  { %v1609_v38 = vsel %vm269_vm3, %v4812_v37, %v1588_v33  ;;  %v1706_v37 = vsub.s32 4, %v4725_v40  ;;  %v1865_v33 = vld [vmem:[%s5374_s7 + $0x60] sm:$0xff] }
 0xa93   :  { %v1707_v51 = vrot.slane %v4731_v42, %v1706_v37 }
 0xa94   :  { %v1590_v34 = vpop.permute.xlu1 %1589 }
 0xa95   :  { %v1610_v45 = vsel %vm269_vm3, %v4814_v39, %v1590_v34  ;;  %v1864_v34 = vld [vmem:[%s5374_s7 + $0x58] sm:$0xff] }
 0xa98   :  { %v1413_v10 = vpop.xlane.xlu0 %1412  ;;  %v1598_v35 = vpop.permute.xlu1 %1597 }
 0xa99   :  { %v1417_v12 = vsub.f32 %v1330_v3, %v1413_v10  ;;  %v1613_v48 = vsel %vm1611_vm5, %v1610_v45, %v1598_v35  ;;  %v1748_v10 = vld [vmem:[%s5373_s6] sm:$0xff]  ;;  %v1863_v35 = vld [vmem:[%s5374_s7 + $0x50] sm:$0xff] }
 0xa9a   :  { %v4498_v13 = vpop.eup %4497  ;;  %v1859_v45 = vld [vmem:[%s5374_s7 + $0x30] sm:$0xff] }
 0xa9b   :  { %v1419_v57 = vmul.f32 1.442695, %v1417_v12  ;;  %v1426_v16 = vsel %vm269_vm3, %v4498_v13, 0.0 }
 0xa9c   :  { %1427 = vadd.xlane.f32.xlu0 %v1426_v16 }
 0xa9d   :  { %4499 = vpow2.f32 %v1419_v57 }
 0xaaa   :  { %v4500_v17 = vpop.eup %4499 }
 0xaab   :  { %v1423_v11 = vsel %vm269_vm3, %v4500_v17, 0.0 }
 0xaac   :  { %1424 = vadd.xlane.f32.xlu0 %v1423_v11 }
 0xac2   :  { %1433 = vrot.lane.b32.xlu0 %v4752_v59, %s4601_s14  ;;  %v1620_v59 = vld [vmem:[%s5372_s5 + $0x18] sm:$0xff] }
 0xac6   :  { %1595 = vrot.lane.b32.xlu0 %v1175_v0, %s4603_s16 }
 0xb25   :  { %v1428_v18 = vpop.xlane.xlu0 %1427 }
 0xb26   :  { %4501 = vrcp.f32 %v1428_v18  ;;  %v1738_v18 = vsub.s32 2, %v4725_v40 }
 0xb33   :  { %v4502_v19 = vpop.eup %4501 }
 0xb34   :  { %v1432_v20 = vmul.f32 %v4502_v19, %v4498_v13  ;;  %v1744_v19 = vsub.s32 3, %v4725_v40 }
 0xb35   :  { %v1425_v21 = vpop.xlane.xlu0 %1424 }
 0xb36   :  { %4503 = vrcp.f32 %v1425_v21  ;;  %4238 = vmatmul.mubr.msk.f32.vlgmr.msra.gmra.mxu1 %vm269_vm3, %v1432_v20  ;;  %v1739_v20 = vrot.slane %v4731_v42, %v1738_v18 }
 0xb37   :  { %4252 = vmatpush3.msra.mxu1 %v1751_v7 }
 0xb38   :  { %4253 = vmatprep.subr.mxu1 %v1750_v8 }
 0xb39   :  { %v1434_v22 = vpop.permute.xlu0 %1433  ;;  %4254 = vmatpush3.msra.mxu1 %v1750_v8 }
 0xb3a   :  { %4231 = vmatpush3.msra.mxu0 %v1434_v22  ;;  %4255 = vmatprep.subr.mxu1 %v1749_v9 }
 0xb3b   :  { %4240 = vmatprep.subr.mxu0 %v1620_v59  ;;  %4256 = vmatpush3.msra.mxu1 %v1749_v9  ;;  %v1948_v9 = vsub.s32 5, %v4725_v40 }
 0xb3c   :  { %4257 = vmatprep.subr.mxu1 %v1748_v10 }
 0xb3d   :  { %v1596_v36 = vpop.permute.xlu0 %1595  ;;  %4258 = vmatpush3.msra.mxu1 %v1748_v10  ;;  %v1949_v10 = vrot.slane %v4731_v42, %v1948_v9 }
 0xb3e   :  { %v1612_v46 = vsel %vm1611_vm5, %v1609_v38, %v1596_v36  ;;  %v1862_v36 = vld [vmem:[%s5374_s7 + $0x48] sm:$0xff]  ;;  %v1861_v38 = vld [vmem:[%s5374_s7 + $0x40] sm:$0xff] }
 0xb43   :  { %v4504_v23 = vpop.eup %4503 }
 0xb44   :  { %v1430_v24 = vmul.f32 %v4504_v23, %v4500_v17  ;;  %v1745_v23 = vrot.slane %v4731_v42, %v1744_v19 }
 0xb46   :  { %4233 = vmatmul.mubr.msk.f32.vlgmr.msra.gmra.mxu0 %vm269_vm3, %v1430_v24 }
 0xb47   :  { %4241 = vmatpush3.msra.mxu0 %v1620_v59 }
 0xb48   :  { %4242 = vmatprep.subr.mxu0 %v1619_v25 }
 0xb49   :  { %4243 = vmatpush3.msra.mxu0 %v1619_v25 }
 0xb4a   :  { %4244 = vmatprep.subr.mxu0 %v1618_v26 }
 0xb4b   :  { %4245 = vmatpush3.msra.mxu0 %v1618_v26 }
 0xb4c   :  { %4246 = vmatprep.subr.mxu0 %v1617_v29 }
 0xb4d   :  { %4247 = vmatpush3.msra.mxu0 %v1617_v29  ;;  %v1868_v29 = vld [vmem:[%s5374_s7 + $0x78] sm:$0xff] }
 0xb4e   :  { %4262 = vmatprep.subr.mxu0 %v1868_v29 }
 0xbf6   :  { %v1581_v27 = vpop.f32.mrf.mxu1 }
 0xbf7   :  { %1605 = vrot.lane.b32.xlu1 %v1581_v27, %s4604_s20 }
 0xbf8   :  { %v4239_v28 = vpop.f32.mrf.mxu1 }
 0xc06   :  { %v1505_v31 = vpop.f32.mrf.mxu0 }
 0xc07   :  { %1603 = vrot.lane.b32.xlu0 %v1505_v31, %s4604_s20  ;;  %v1867_v31 = vld [vmem:[%s5374_s7 + $0x70] sm:$0xff] }
 0xc08   :  { %v4234_v32 = vpop.f32.mrf.mxu0 }
 0xc09   :  { %v1866_v32 = vld [vmem:[%s5374_s7 + $0x68] sm:$0xff] }
 0xc69   :  { %v1606_v44 = vpop.permute.xlu1 %1605 }
 0xc6a   :  { %v1616_v50 = vsel %vm1614_vm6, %v1613_v48, %v1606_v44  ;;  %v1860_v44 = vld [vmem:[%s5374_s7 + $0x38] sm:$0xff] }
 0xc6b   :  { %v1856_v48 = vld [vmem:[%s5374_s7 + $0x18] sm:$0xff] }
 0xc79   :  { %v1604_v47 = vpop.permute.xlu0 %1603 }
 0xc7a   :  { %v1615_v49 = vsel %vm1614_vm6, %v1612_v46, %v1604_v47  ;;  %v1858_v46 = vld [vmem:[%s5374_s7 + $0x28] sm:$0xff]  ;;  %v1857_v47 = vld [vmem:[%s5374_s7 + $0x20] sm:$0xff] }
 0xc7b   :  { %4248 = vmatprep.mubr.msk.f32.mxu0 %vm137_vm1, %v1615_v49  ;;  %v1855_v49 = vld [vmem:[%s5374_s7 + $0x10] sm:$0xff] }
 0xc7c   :  { %4249 = vmatmul.mubr.msk.f32.vlgmr.msra.gmra.mxu0 %vm137_vm1, %v1616_v50  ;;  %v1854_v50 = vld [vmem:[%s5374_s7 + $0x8] sm:$0xff] }
 0xc7d   :  { %4263 = vmatpush3.msra.mxu0 %v1868_v29  ;;  %v3920_v29 = vld [vmem:[%s5371_s4 + $0x30] sm:$0xff] }
 0xc7e   :  { %4264 = vmatprep.subr.mxu0 %v1867_v31 }
 0xc7f   :  { %4265 = vmatpush3.msra.mxu0 %v1867_v31  ;;  %v3919_v31 = vld [vmem:[%s5371_s4 + $0x28] sm:$0xff] }
 0xc80   :  { %4266 = vmatprep.subr.mxu0 %v1866_v32 }
 0xc81   :  { %4267 = vmatpush3.msra.mxu0 %v1866_v32  ;;  %v3918_v32 = vld [vmem:[%s5371_s4 + $0x20] sm:$0xff] }
 0xc82   :  { %4268 = vmatprep.subr.mxu0 %v1865_v33 }
 0xc83   :  { %4269 = vmatpush3.msra.mxu0 %v1865_v33 }
 0xc84   :  { %4270 = vmatprep.subr.mxu0 %v1864_v34 }
 0xc85   :  { %4271 = vmatpush3.msra.mxu0 %v1864_v34 }
 0xc86   :  { %4272 = vmatprep.subr.mxu0 %v1863_v35 }
 0xc87   :  { %4273 = vmatpush3.msra.mxu0 %v1863_v35 }
 0xc88   :  { %4274 = vmatprep.subr.mxu0 %v1862_v36 }
 0xc89   :  { %4275 = vmatpush3.msra.mxu0 %v1862_v36 }
 0xc8a   :  { %4276 = vmatprep.subr.mxu0 %v1861_v38 }
 0xc8b   :  { %4277 = vmatpush3.msra.mxu0 %v1861_v38 }
 0xc8c   :  { %4278 = vmatprep.subr.mxu0 %v1860_v44 }
 0xc8d   :  { %4279 = vmatpush3.msra.mxu0 %v1860_v44 }
 0xc8e   :  { %4280 = vmatprep.subr.mxu0 %v1859_v45 }
 0xc8f   :  { %4281 = vmatpush3.msra.mxu0 %v1859_v45  ;;  %v5061_v45 = vld [vmem:[%s5375_s8 + $0x8] sm:$0xff] }
 0xc90   :  { %4282 = vmatprep.subr.mxu0 %v1858_v46 }
 0xc91   :  { %4283 = vmatpush3.msra.mxu0 %v1858_v46 }
 0xc92   :  { %4284 = vmatprep.subr.mxu0 %v1857_v47 }
 0xc93   :  { %4285 = vmatpush3.msra.mxu0 %v1857_v47  ;;  %v1983_v47 = vrot.slane %v5061_v45, %v167_v41  ;;  %v2000_v41 = vrot.slane %v5061_v45, %v183_v54 }
 0xc94   :  { %4286 = vmatprep.subr.mxu0 %v1856_v48 }
 0xc95   :  { %4287 = vmatpush3.msra.mxu0 %v1856_v48 }
 0xc96   :  { %4288 = vmatprep.subr.mxu0 %v1855_v49 }
 0xc97   :  { %4289 = vmatpush3.msra.mxu0 %v1855_v49 }
 0xc98   :  { %4290 = vmatprep.subr.mxu0 %v1854_v50 }
 0xc99   :  { %4291 = vmatpush3.msra.mxu0 %v1854_v50 }
 0xd3c   :  { %v4250_v39 = vpop.f32.mrf.mxu0 }
 0xd3d   :  { %v1703_v52 = vadd.f32 %v4250_v39, %v4701_v15  ;;  %v1754_v39 = vsub.s32 7, %v4725_v40 }
 0xd3e   :  { %v1693_v53 = vpop.f32.mrf.mxu0 }
 0xd3f   :  { %v4937_v55 = vadd.f32 %v1707_v51, %v1703_v52  ;;  %v1702_v56 = vadd.f32 %v1693_v53, %v4699_v14  ;;  %v1755_v52 = vrot.slane %v4731_v42, %v1754_v39 }
 0xd41   :  { %v4940_v58 = vadd.f32 %v1707_v51, %v1702_v56  ;;  %v1713_v60 = vsel %vm137_vm1, %v4937_v55, 0.0  ;;  %v1853_v51 = vld [vmem:[%s5374_s7] sm:$0xff] }
 0xd42   :  { %1714 = vadd.xlane.f32.xlu1 %v1713_v60  ;;  %4292 = vmatprep.subr.mxu0 %v1853_v51 }
 0xd43   :  { %v1710_v61 = vsel %vm137_vm1, %v4940_v58, 0.0  ;;  %4293 = vmatpush3.msra.mxu0 %v1853_v51 }
 0xd44   :  { %1711 = vadd.xlane.f32.xlu0 %v1710_v61  ;;  %4338 = vmatprep.subr.mxu0 %v4589_v30 }
 0xdcb   :  { %v1715_v62 = vpop.xlane.xlu1 %1714 }
 0xdcc   :  { %v1717_v0 = vmul.f32 0.03125, %v1715_v62 }
 0xdcd   :  { %v1712_v1 = vpop.xlane.xlu0 %1711 }
 0xdce   :  { %v1716_v2 = vmul.f32 0.03125, %v1712_v1  ;;  %v1719_v15 = vsub.f32 %v4937_v55, %v1717_v0 }
 0xdd0   :  { %v1718_v3 = vsub.f32 %v4940_v58, %v1716_v2  ;;  %v1721_v5 = vmul.f32 %v1719_v15, %v1719_v15 }
 0xdd2   :  { %v1720_v4 = vmul.f32 %v1718_v3, %v1718_v3  ;;  %v1725_v6 = vsel %vm137_vm1, %v1721_v5, 0.0 }
 0xdd4   :  { %v1722_v14 = vsel %vm137_vm1, %v1720_v4, 0.0 }
 0xdd5   :  { %1723 = vadd.xlane.f32.xlu0 %v1722_v14 }
 0xdd9   :  { %1726 = vadd.xlane.f32.xlu0 %v1725_v6 }
 0xe5e   :  { %v1724_v12 = vpop.xlane.xlu0 %1723 }
 0xe5f   :  { %v1728_v13 = vmul.f32 0.03125, %v1724_v12 }
 0xe61   :  { %v1730_v57 = vadd.f32 1e-05, %v1728_v13 }
 0xe62   :  { %v1727_v16 = vpop.xlane.xlu0 %1726 }
 0xe63   :  { %4505 = vrsqrt.f32 %v1730_v57  ;;  %v1729_v17 = vmul.f32 0.03125, %v1727_v16 }
 0xe65   :  { %v1731_v11 = vadd.f32 1e-05, %v1729_v17 }
 0xe67   :  { %4507 = vrsqrt.f32 %v1731_v11 }
 0xe70   :  { %v4506_v21 = vpop.eup %4505 }
 0xe71   :  { %v1734_v22 = vmul.f32 %v4506_v21, %v1718_v3 }
 0xe73   :  { %v1740_v24 = vmul.f32 %v1739_v20, %v1734_v22 }
 0xe74   :  { %v4508_v59 = vpop.eup %4507 }
 0xe75   :  { %v1735_v25 = vmul.f32 %v4508_v59, %v1719_v15  ;;  %v1746_v26 = vadd.f32 %v1745_v23, %v1740_v24 }
 0xe77   :  { %v1741_v27 = vmul.f32 %v1739_v20, %v1735_v25  ;;  %4259 = vmatprep.mubr.msk.f32.mxu1 %vm137_vm1, %v1746_v26 }
 0xe79   :  { %v1747_v28 = vadd.f32 %v1745_v23, %v1741_v27 }
 0xe7b   :  { %4260 = vmatmul.mubr.msk.f32.vlgmr.msra.gmra.mxu1 %vm137_vm1, %v1747_v28  ;;  %v3921_v28 = vld [vmem:[%s5371_s4 + $0x38] sm:$0xff]  ;;  %s4567_s4 = scalar_lea.vmem %s3876_s17, 32 }
 0xe7c   :  { %4297 = vmatprep.subr.mxu1 %v3921_v28  ;;  %p4568_p0 = scmp.ne.s32.totalorder %s3876_s17, %s4567_s4  ;;  %p4573_p2 = scmp.lt.s32.totalorder %s4567_s4, %s4567_s4 }
 0xe7d   :  { %4298 = vmatpush3.msra.mxu1 %v3921_v28 }
 0xe7e   :  { %4299 = vmatprep.subr.mxu1 %v3920_v29  ;;  %p4574_p3 = por %p4573_p2, %p4572_p1 }
 0xe7f   :  { %4300 = vmatpush3.msra.mxu1 %v3920_v29 }
 0xe80   :  { %4301 = vmatprep.subr.mxu1 %v3919_v31  ;;  %p4575_p4 = pnand %p4574_p3, %p4568_p0 }
 0xe81   :  { %4302 = vmatpush3.msra.mxu1 %v3919_v31 }
 0xe82   :  { %4303 = vmatprep.subr.mxu1 %v3918_v32 }
 0xe83   :  { %4304 = vmatpush3.msra.mxu1 %v3918_v32 }
 0xe84   :  { %4308 = vmatprep.subr.mxu1 %v4589_v30 }
 0xf3b   :  { %v4261_v53 = vpop.f32.mrf.mxu1 }
 0xf3c   :  { %v1834_v56 = vadd.f32 %v4261_v53, %v1755_v52 }
 0xf3d   :  { %v1828_v60 = vpop.f32.mrf.mxu1 }
 0xf3e   :  { %v3916_v61 = vmul.f32 -1.702, %v1834_v56  ;;  %v1829_v62 = vadd.f32 %v1828_v60, %v1755_v52  ;;  %v1989_v52 = vrot.slane %v5061_v45, %v173_v43 }
 0xf40   :  { %v1843_v0 = vmul.f32 1.442695, %v3916_v61  ;;  %v3915_v1 = vmul.f32 -1.702, %v1829_v62 }
 0xf42   :  { %4509 = vpow2.f32 %v1843_v0  ;;  %v1841_v2 = vmul.f32 1.442695, %v3915_v1 }
 0xf44   :  { %4511 = vpow2.f32 %v1841_v2 }
 0xf4f   :  { %v4510_v15 = vpop.eup %4509 }
 0xf50   :  { %v1846_v3 = vadd.f32 1.0, %v4510_v15 }
 0xf51   :  { %v4512_v4 = vpop.eup %4511 }
 0xf52   :  { %v1845_v14 = vadd.f32 1.0, %v4512_v4  ;;  %4513 = vrcp.f32 %v1846_v3 }
 0xf54   :  { %4515 = vrcp.f32 %v1845_v14 }
 0xf5f   :  { %v4514_v5 = vpop.eup %4513 }
 0xf60   :  { %v1852_v8 = vmul.f32 %v4514_v5, %v1834_v56 }
 0xf61   :  { %v4516_v6 = vpop.eup %4515 }
 0xf62   :  { %v1851_v7 = vmul.f32 %v4516_v6, %v1829_v62 }
 0xf64   :  { %4294 = vmatprep.mubr.f32.mxu0 %v1851_v7 }
 0xf65   :  { %4295 = vmatmul.mubr.f32.vlgmr.msra.gmra.mxu0 %v1852_v8 }
 0xf66   :  { %4340 = vmatprep.mubr.msk.f32.mxu0 %vm4590_vm2, %v4589_v30 }
0x1025   :  { %v4296_v12 = vpop.f32.mrf.mxu0 }
0x1026   :  { %v1945_v13 = vadd.f32 %v4296_v12, %v4937_v55 }
0x1027   :  { %v1935_v57 = vpop.f32.mrf.mxu0 }
0x1028   :  { %v5032_v16 = vadd.f32 %v1949_v10, %v1945_v13  ;;  %v1944_v17 = vadd.f32 %v1935_v57, %v4940_v58 }
0x102a   :  { %v5035_v11 = vadd.f32 %v1949_v10, %v1944_v17  ;;  %v1957_v20 = vsel %vm137_vm1, %v5032_v16, 0.0 }
0x102b   :  { %1958 = vadd.xlane.f32.xlu1 %v1957_v20 }
0x102c   :  { %v1954_v21 = vsel %vm137_vm1, %v5035_v11, 0.0 }
0x102d   :  { %1955 = vadd.xlane.f32.xlu0 %v1954_v21 }
0x10b4   :  { %v1959_v22 = vpop.xlane.xlu1 %1958 }
0x10b5   :  { %v1961_v42 = vmul.f32 0.03125, %v1959_v22 }
0x10b6   :  { %v1956_v23 = vpop.xlane.xlu0 %1955 }
0x10b7   :  { %v1963_v55 = vsub.f32 %v5032_v16, %v1961_v42  ;;  %v1960_v24 = vmul.f32 0.03125, %v1956_v23 }
0x10b9   :  { %v1962_v59 = vsub.f32 %v5035_v11, %v1960_v24  ;;  %v1965_v25 = vmul.f32 %v1963_v55, %v1963_v55 }
0x10bb   :  { %v1969_v58 = vsel %vm137_vm1, %v1965_v25, 0.0  ;;  %v1964_v26 = vmul.f32 %v1962_v59, %v1962_v59 }
0x10bc   :  { %1970 = vadd.xlane.f32.xlu1 %v1969_v58 }
0x10bd   :  { %v1966_v27 = vsel %vm137_vm1, %v1964_v26, 0.0 }
0x10be   :  { %1967 = vadd.xlane.f32.xlu0 %v1966_v27 }
0x1145   :  { %v1971_v33 = vpop.xlane.xlu1 %1970 }
0x1146   :  { %v1973_v34 = vmul.f32 0.03125, %v1971_v33 }
0x1147   :  { %v1968_v35 = vpop.xlane.xlu0 %1967 }
0x1148   :  { %v1975_v36 = vadd.f32 1e-05, %v1973_v34  ;;  %v1972_v38 = vmul.f32 0.03125, %v1968_v35 }
0x114a   :  { %4517 = vrsqrt.f32 %v1975_v36  ;;  %v1974_v44 = vadd.f32 1e-05, %v1972_v38 }
0x114c   :  { %4519 = vrsqrt.f32 %v1974_v44 }
0x1157   :  { %v4518_v46 = vpop.eup %4517 }
0x1158   :  { %v1979_v48 = vmul.f32 %v4518_v46, %v1963_v55 }
0x1159   :  { %v4520_v49 = vpop.eup %4519 }
0x115a   :  { %v1978_v50 = vmul.f32 %v4520_v49, %v1962_v59  ;;  %v1985_v51 = vmul.f32 %v1983_v47, %v1979_v48 }
0x115c   :  { %v1984_v53 = vmul.f32 %v1983_v47, %v1978_v50  ;;  %v1991_v60 = vadd.f32 %v1989_v52, %v1985_v51 }
0x115e   :  { %v1990_v56 = vadd.f32 %v1989_v52, %v1984_v53 }
0x1160   :  { %4305 = vmatprep.mubr.msk.f32.mxu1 %vm137_vm1, %v1990_v56 }
0x1161   :  { %4306 = vmatmul.mubr.msk.f32.vlgmr.msra.gmra.mxu1 %vm137_vm1, %v1991_v60 }
0x1162   :  { %4310 = vmatprep.mubr.msk.f32.mxu1 %vm4590_vm2, %v4589_v30 }
0x1221   :  { %v4307_v61 = vpop.f32.mrf.mxu1 }
0x1222   :  { %v5076_v62 = vadd.f32 %v4307_v61, %v2000_v41 }
0x1223   :  { %v2073_v0 = vpop.f32.mrf.mxu1 }
0x1224   :  { %v5078_v1 = vadd.f32 %v2073_v0, %v2000_v41  ;;  %2160 = vrot.lane.b32.xlu1 %v5076_v62, %s4591_s24 }
0x1226   :  { %2083 = vrot.lane.b32.xlu0 %v5078_v1, %s4591_s24 }
0x1296   :  { %v2161_v2 = vpop.permute.xlu1 %2160 }
0x1298   :  { %v2084_v43 = vpop.permute.xlu0 %2083 }
0x1299   :  { %4309 = vmatpush3.xpose.msk.msra.mxu1 %vm269_vm3, %v2084_v43 }
0x129a   :  { %4313 = vmatprep.subr.mxu1 %v4589_v30 }
0x129c   :  { %4311 = vmatmul.mubr.msk.f32.vlgmr.msra.gmra.mxu1 %vm269_vm3, %v5078_v1 }
0x129d   :  { %4314 = vmatpush3.xpose.msk.msra.mxu1 %vm269_vm3, %v2161_v2  ;;  %4315 = vmatprep.mubr.msk.f32.mxu1 %vm4590_vm2, %v4589_v30 }
0x129e   :  { %4318 = vmatprep.subr.mxu1 %v4589_v30 }
0x12a0   :  { %4316 = vmatmul.mubr.msk.f32.vlgmr.msra.gmra.mxu1 %vm269_vm3, %v5076_v62 }
0x12a1   :  { %4320 = vmatprep.mubr.msk.f32.mxu1 %vm4590_vm2, %v4589_v30 }
0x135c   :  { %v2155_v54 = vpop.f32.mrf.mxu1 }
0x135d   :  { %v2156_v15 = vadd.f32 %v2155_v54, %v4772_v63 }
0x135e   :  { %v4312_v3 = vpop.f32.mrf.mxu1 }
0x135f   :  { %v2236_v4 = vsel %vm269_vm3, %v2156_v15, -inf }
0x1360   :  { %2237 = vmax.xlane.f32.xlu1 %v2236_v4  ;;  %v2232_v14 = vpop.f32.mrf.mxu1 }
0x1361   :  { %v2233_v5 = vadd.f32 %v2232_v14, %v4772_v63 }
0x1362   :  { %v4317_v6 = vpop.f32.mrf.mxu1 }
0x1363   :  { %v2239_v7 = vsel %vm269_vm3, %v2233_v5, -inf }
0x1364   :  { %2240 = vmax.xlane.f32.xlu0 %v2239_v7 }
0x1371   :  { %2334 = vrot.lane.b32.xlu1 %v5076_v62, %s4592_s25 }
0x1375   :  { %2412 = vrot.lane.b32.xlu1 %v5078_v1, %s4593_s26 }
0x1379   :  { %2410 = vrot.lane.b32.xlu1 %v5078_v1, %s4594_s27 }
0x13e9   :  { %v2238_v8 = vpop.xlane.xlu1 %2237 }
0x13ea   :  { %v2242_v10 = vsub.f32 %v2156_v15, %v2238_v8 }
0x13ec   :  { %v2244_v12 = vmul.f32 1.442695, %v2242_v10 }
0x13ed   :  { %v2241_v13 = vpop.xlane.xlu0 %2240  ;;  %v2335_v23 = vpop.permute.xlu1 %2334 }
0x13ee   :  { %4521 = vpow2.f32 %v2244_v12  ;;  %v2243_v57 = vsub.f32 %v2233_v5, %v2241_v13 }
0x13f0   :  { %v2246_v17 = vmul.f32 1.442695, %v2243_v57 }
0x13f1   :  { %v2413_v55 = vpop.permute.xlu1 %2412 }
0x13f2   :  { %4523 = vpow2.f32 %v2246_v17 }
0x13f5   :  { %v2411_v24 = vpop.permute.xlu1 %2410 }
0x13fb   :  { %v4522_v20 = vpop.eup %4521 }
0x13fc   :  { %v2248_v21 = vsel %vm269_vm3, %v4522_v20, 0.0 }
0x13fd   :  { %2249 = vadd.xlane.f32.xlu0 %v2248_v21 }
0x13ff   :  { %v4524_v22 = vpop.eup %4523 }
0x1400   :  { %v2251_v42 = vsel %vm269_vm3, %v4524_v22, 0.0 }
0x1401   :  { %2252 = vadd.xlane.f32.xlu1 %v2251_v42 }
0x1412   :  { %2488 = vrot.lane.b32.xlu1 %v5076_v62, %s4594_s27 }
0x1413   :  { %2258 = vrot.lane.b32.xlu0 %v5078_v1, %s4592_s25 }
0x1417   :  { %2490 = vrot.lane.b32.xlu0 %v5076_v62, %s4593_s26 }
0x1486   :  { %v2250_v59 = vpop.xlane.xlu0 %2249 }
0x1487   :  { %4525 = vrcp.f32 %v2250_v59 }
0x148a   :  { %v2253_v25 = vpop.xlane.xlu1 %2252  ;;  %v2259_v58 = vpop.permute.xlu0 %2258 }
0x148b   :  { %4527 = vrcp.f32 %v2253_v25  ;;  %4319 = vmatpush3.msra.mxu1 %v2259_v58 }
0x148c   :  { %4323 = vmatprep.subr.mxu1 %v4589_v30 }
0x148e   :  { %v2491_v31 = vpop.permute.xlu0 %2490  ;;  %v2489_v32 = vpop.permute.xlu1 %2488 }
0x1494   :  { %v4526_v26 = vpop.eup %4525 }
0x1495   :  { %v2255_v27 = vmul.f32 %v4526_v26, %v4522_v20 }
0x1497   :  { %4321 = vmatmul.mubr.msk.f32.vlgmr.msra.gmra.mxu1 %vm269_vm3, %v2255_v27 }
0x1498   :  { %v4528_v28 = vpop.eup %4527  ;;  %4324 = vmatpush3.msra.mxu1 %v2335_v23  ;;  %4325 = vmatprep.mubr.msk.f32.mxu1 %vm4590_vm2, %v4589_v30 }
0x1499   :  { %4328 = vmatprep.subr.mxu1 %v4589_v30  ;;  %v2257_v29 = vmul.f32 %v4528_v28, %v4524_v22 }
0x149b   :  { %4326 = vmatmul.mubr.msk.f32.vlgmr.msra.gmra.mxu1 %vm269_vm3, %v2257_v29 }
0x149c   :  { %4329 = vmatpush3.xpose.msk.msra.mxu1 %vm269_vm3, %v2413_v55  ;;  %4330 = vmatprep.mubr.msk.f32.mxu1 %vm4590_vm2, %v4589_v30 }
0x149d   :  { %4333 = vmatprep.subr.mxu1 %v4589_v30 }
0x149f   :  { %4331 = vmatmul.mubr.msk.f32.vlgmr.msra.gmra.mxu1 %vm269_vm3, %v2411_v24 }
0x14a0   :  { %4334 = vmatpush3.xpose.msk.msra.mxu1 %vm269_vm3, %v2491_v31  ;;  %4335 = vmatprep.mubr.msk.f32.mxu1 %vm4590_vm2, %v4589_v30 }
0x14a1   :  { %4343 = vmatprep.subr.mxu1 %v4589_v30 }
0x14a3   :  { %4336 = vmatmul.mubr.msk.f32.vlgmr.msra.gmra.mxu1 %vm269_vm3, %v2489_v32 }
0x14a4   :  { %4345 = vmatprep.mubr.msk.f32.mxu1 %vm4590_vm2, %v4589_v30 }
0x1557   :  { %v5132_v33 = vpop.f32.mrf.mxu1 }
0x1559   :  { %v4322_v34 = vpop.f32.mrf.mxu1 }
0x155b   :  { %v5134_v35 = vpop.f32.mrf.mxu1 }
0x155d   :  { %v4327_v36 = vpop.f32.mrf.mxu1 }
0x155f   :  { %v2484_v38 = vpop.f32.mrf.mxu1 }
0x1560   :  { %v2485_v44 = vadd.f32 %v2484_v38, %v4772_v63 }
0x1561   :  { %v4332_v46 = vpop.f32.mrf.mxu1 }
0x1562   :  { %v2566_v47 = vsel %vm269_vm3, %v2485_v44, -inf }
0x1563   :  { %2567 = vmax.xlane.f32.xlu0 %v2566_v47  ;;  %v2562_v48 = vpop.f32.mrf.mxu1 }
0x1564   :  { %v2563_v49 = vadd.f32 %v2562_v48, %v4772_v63 }
0x1565   :  { %v4337_v50 = vpop.f32.mrf.mxu1 }
0x1566   :  { %v2569_v51 = vsel %vm269_vm3, %v2563_v49, -inf }
0x1567   :  { %2570 = vmax.xlane.f32.xlu1 %v2569_v51 }
0x1578   :  { %2664 = vrot.lane.b32.xlu1 %v5076_v62, %s4595_s28 }
0x1579   :  { %2588 = vrot.lane.b32.xlu0 %v5078_v1, %s4595_s28 }
0x157c   :  { %2742 = vrot.lane.b32.xlu1 %v5078_v1, %s4596_s29 }
0x1580   :  { %2820 = vrot.lane.b32.xlu1 %v5076_v62, %s4596_s29 }
0x1584   :  { %2818 = vrot.lane.b32.xlu1 %v5076_v62, %s4597_s30 }
0x15ec   :  { %v2568_v52 = vpop.xlane.xlu0 %2567 }
0x15ed   :  { %v2572_v53 = vsub.f32 %v2485_v44, %v2568_v52 }
0x15ef   :  { %v2574_v56 = vmul.f32 1.442695, %v2572_v53 }
0x15f0   :  { %v2589_v60 = vpop.permute.xlu0 %2588  ;;  %v2571_v41 = vpop.xlane.xlu1 %2570 }
0x15f1   :  { %4529 = vpow2.f32 %v2574_v56  ;;  %v2573_v61 = vsub.f32 %v2563_v49, %v2571_v41  ;;  %4339 = vmatpush3.msra.mxu0 %v2589_v60 }
0x15f2   :  { %4348 = vmatprep.subr.mxu0 %v4589_v30 }
0x15f3   :  { %v2576_v0 = vmul.f32 1.442695, %v2573_v61 }
0x15f4   :  { %v2665_v43 = vpop.permute.xlu1 %2664 }
0x15f5   :  { %4531 = vpow2.f32 %v2576_v0  ;;  %4344 = vmatpush3.msra.mxu1 %v2665_v43 }
0x15f6   :  { %4353 = vmatprep.subr.mxu1 %v4589_v30 }
0x15f8   :  { %v2743_v5 = vpop.permute.xlu1 %2742 }
0x15fc   :  { %v2821_v10 = vpop.permute.xlu1 %2820 }
0x15fe   :  { %v4530_v2 = vpop.eup %4529 }
0x15ff   :  { %v2578_v54 = vsel %vm269_vm3, %v4530_v2, 0.0 }
0x1600   :  { %2579 = vadd.xlane.f32.xlu0 %v2578_v54  ;;  %v2819_v57 = vpop.permute.xlu1 %2818 }
0x1602   :  { %v4532_v15 = vpop.eup %4531 }
0x1603   :  { %v2581_v3 = vsel %vm269_vm3, %v4532_v15, 0.0 }
0x1604   :  { %2582 = vadd.xlane.f32.xlu0 %v2581_v3 }
0x161a   :  { %2740 = vrot.lane.b32.xlu0 %v5078_v1, %s4597_s30 }
0x1689   :  { %v2580_v4 = vpop.xlane.xlu0 %2579 }
0x168a   :  { %4533 = vrcp.f32 %v2580_v4 }
0x168d   :  { %v2583_v14 = vpop.xlane.xlu0 %2582 }
0x168e   :  { %4535 = vrcp.f32 %v2583_v14 }
0x1691   :  { %v2741_v13 = vpop.permute.xlu0 %2740 }
0x1697   :  { %v4534_v6 = vpop.eup %4533 }
0x1698   :  { %v2585_v7 = vmul.f32 %v4534_v6, %v4530_v2 }
0x169a   :  { %4341 = vmatmul.mubr.msk.f32.vlgmr.msra.gmra.mxu0 %vm269_vm3, %v2585_v7 }
0x169b   :  { %v4536_v8 = vpop.eup %4535  ;;  %4349 = vmatpush3.xpose.msk.msra.mxu0 %vm269_vm3, %v2743_v5  ;;  %4350 = vmatprep.mubr.msk.f32.mxu0 %vm4590_vm2, %v4589_v30 }
0x169c   :  { %v2587_v12 = vmul.f32 %v4536_v8, %v4532_v15  ;;  %4358 = vmatprep.subr.mxu0 %v4589_v30 }
0x169e   :  { %4346 = vmatmul.mubr.msk.f32.vlgmr.msra.gmra.mxu1 %vm269_vm3, %v2587_v12  ;;  %4351 = vmatmul.mubr.msk.f32.vlgmr.msra.gmra.mxu0 %vm269_vm3, %v2741_v13 }
0x169f   :  { %4354 = vmatpush3.xpose.msk.msra.mxu1 %vm269_vm3, %v2821_v10  ;;  %4355 = vmatprep.mubr.msk.f32.mxu1 %vm4590_vm2, %v4589_v30 }
0x16a0   :  { %4363 = vmatprep.subr.mxu1 %v4589_v30  ;;  %4360 = vmatprep.mubr.msk.f32.mxu0 %vm4590_vm2, %v4589_v30 }
0x16a2   :  { %4356 = vmatmul.mubr.msk.f32.vlgmr.msra.gmra.mxu1 %vm269_vm3, %v2819_v57 }
0x16a3   :  { %4365 = vmatprep.mubr.msk.f32.mxu1 %vm4590_vm2, %v4589_v30 }
0x175a   :  { %v5172_v17 = vpop.f32.mrf.mxu0 }
0x175c   :  { %v4342_v20 = vpop.f32.mrf.mxu0 }
0x175e   :  { %v5174_v21 = vpop.f32.mrf.mxu1  ;;  %v2814_v22 = vpop.f32.mrf.mxu0 }
0x175f   :  { %v2815_v42 = vadd.f32 %v2814_v22, %v4772_v63 }
0x1760   :  { %v4347_v23 = vpop.f32.mrf.mxu1  ;;  %v4352_v55 = vpop.f32.mrf.mxu0 }
0x1761   :  { %v2896_v24 = vsel %vm269_vm3, %v2815_v42, -inf }
0x1762   :  { %2897 = vmax.xlane.f32.xlu0 %v2896_v24  ;;  %v2892_v59 = vpop.f32.mrf.mxu1 }
0x1763   :  { %v2893_v25 = vadd.f32 %v2892_v59, %v4772_v63 }
0x1764   :  { %v4357_v58 = vpop.f32.mrf.mxu1 }
0x1765   :  { %v2899_v26 = vsel %vm269_vm3, %v2893_v25, -inf }
0x1766   :  { %2900 = vmax.xlane.f32.xlu1 %v2899_v26 }
0x1777   :  { %2994 = vrot.lane.b32.xlu1 %v5076_v62, %s4598_s11 }
0x1778   :  { %2918 = vrot.lane.b32.xlu0 %v5078_v1, %s4598_s11 }
0x177b   :  { %3072 = vrot.lane.b32.xlu1 %v5078_v1, %s4599_s12 }
0x177f   :  { %3150 = vrot.lane.b32.xlu1 %v5076_v62, %s4599_s12 }
0x1783   :  { %3148 = vrot.lane.b32.xlu1 %v5076_v62, %s4600_s13 }
0x17eb   :  { %v2898_v27 = vpop.xlane.xlu0 %2897 }
0x17ec   :  { %v2902_v28 = vsub.f32 %v2815_v42, %v2898_v27 }
0x17ee   :  { %v2904_v29 = vmul.f32 1.442695, %v2902_v28  ;;  %v3950_v28 = vld [vmem:[%s5372_s5 + $0x30] sm:$0xff] }
0x17ef   :  { %v2919_v31 = vpop.permute.xlu0 %2918  ;;  %v2901_v32 = vpop.xlane.xlu1 %2900 }
0x17f0   :  { %4537 = vpow2.f32 %v2904_v29  ;;  %v2903_v34 = vsub.f32 %v2893_v25, %v2901_v32  ;;  %4359 = vmatpush3.msra.mxu0 %v2919_v31  ;;  %v3949_v29 = vld [vmem:[%s5372_s5 + $0x28] sm:$0xff]  ;;  %v3948_v31 = vld [vmem:[%s5372_s5 + $0x20] sm:$0xff] }
0x17f1   :  { %4368 = vmatprep.subr.mxu0 %v4589_v30 }
0x17f2   :  { %v2906_v36 = vmul.f32 1.442695, %v2903_v34 }
0x17f3   :  { %v2995_v38 = vpop.permute.xlu1 %2994 }
0x17f4   :  { %4539 = vpow2.f32 %v2906_v36  ;;  %4364 = vmatpush3.msra.mxu1 %v2995_v38 }
0x17f5   :  { %4373 = vmatprep.subr.mxu1 %v4589_v30 }
0x17f7   :  { %v3073_v51 = vpop.permute.xlu1 %3072 }
0x17fb   :  { %v3151_v60 = vpop.permute.xlu1 %3150 }
0x17fd   :  { %v4538_v44 = vpop.eup %4537 }
0x17fe   :  { %v2908_v46 = vsel %vm269_vm3, %v4538_v44, 0.0 }
0x17ff   :  { %2909 = vadd.xlane.f32.xlu0 %v2908_v46  ;;  %v3149_v0 = vpop.permute.xlu1 %3148 }
0x1801   :  { %v4540_v47 = vpop.eup %4539 }
0x1802   :  { %v2911_v48 = vsel %vm269_vm3, %v4540_v47, 0.0 }
0x1803   :  { %2912 = vadd.xlane.f32.xlu0 %v2911_v48 }
0x1819   :  { %3070 = vrot.lane.b32.xlu0 %v5078_v1, %s4600_s13 }
0x1888   :  { %v2910_v49 = vpop.xlane.xlu0 %2909 }
0x1889   :  { %4541 = vrcp.f32 %v2910_v49 }
0x188c   :  { %v2913_v50 = vpop.xlane.xlu0 %2912 }
0x188d   :  { %4543 = vrcp.f32 %v2913_v50 }
0x1890   :  { %v3071_v61 = vpop.permute.xlu0 %3070 }
0x1896   :  { %v4542_v52 = vpop.eup %4541 }
0x1897   :  { %v2915_v53 = vmul.f32 %v4542_v52, %v4538_v44 }
0x1899   :  { %4361 = vmatmul.mubr.msk.f32.vlgmr.msra.gmra.mxu0 %vm269_vm3, %v2915_v53 }
0x189a   :  { %v4544_v56 = vpop.eup %4543  ;;  %4369 = vmatpush3.xpose.msk.msra.mxu0 %vm269_vm3, %v3073_v51  ;;  %4370 = vmatprep.mubr.msk.f32.mxu0 %vm4590_vm2, %v4589_v30 }
0x189b   :  { %v2917_v41 = vmul.f32 %v4544_v56, %v4540_v47  ;;  %4378 = vmatprep.subr.mxu0 %v4589_v30 }
0x189d   :  { %4366 = vmatmul.mubr.msk.f32.vlgmr.msra.gmra.mxu1 %vm269_vm3, %v2917_v41  ;;  %4371 = vmatmul.mubr.msk.f32.vlgmr.msra.gmra.mxu0 %vm269_vm3, %v3071_v61 }
0x189e   :  { %4374 = vmatpush3.xpose.msk.msra.mxu1 %vm269_vm3, %v3151_v60  ;;  %4375 = vmatprep.mubr.msk.f32.mxu1 %vm4590_vm2, %v4589_v30 }
0x189f   :  { %4383 = vmatprep.subr.mxu1 %v4589_v30  ;;  %4380 = vmatprep.mubr.msk.f32.mxu0 %vm4590_vm2, %v4589_v30 }
0x18a1   :  { %4376 = vmatmul.mubr.msk.f32.vlgmr.msra.gmra.mxu1 %vm269_vm3, %v3149_v0 }
0x18a2   :  { %4385 = vmatprep.mubr.msk.f32.mxu1 %vm4590_vm2, %v4589_v30 }
0x1959   :  { %v2990_v43 = vpop.f32.mrf.mxu0 }
0x195b   :  { %v4362_v2 = vpop.f32.mrf.mxu0 }
0x195d   :  { %v3066_v54 = vpop.f32.mrf.mxu1  ;;  %v3144_v15 = vpop.f32.mrf.mxu0 }
0x195e   :  { %v3145_v3 = vadd.f32 %v3144_v15, %v4772_v63 }
0x195f   :  { %v4367_v4 = vpop.f32.mrf.mxu1  ;;  %v4372_v14 = vpop.f32.mrf.mxu0 }
0x1960   :  { %v3226_v5 = vsel %vm269_vm3, %v3145_v3, -inf }
0x1961   :  { %3227 = vmax.xlane.f32.xlu0 %v3226_v5  ;;  %v3222_v6 = vpop.f32.mrf.mxu1 }
0x1962   :  { %v3223_v7 = vadd.f32 %v3222_v6, %v4772_v63 }
0x1963   :  { %v4377_v8 = vpop.f32.mrf.mxu1 }
0x1964   :  { %v3229_v10 = vsel %vm269_vm3, %v3223_v7, -inf }
0x1965   :  { %3230 = vmax.xlane.f32.xlu1 %v3229_v10 }
0x1976   :  { %3324 = vrot.lane.b32.xlu1 %v5076_v62, %s4601_s14 }
0x197a   :  { %3402 = vrot.lane.b32.xlu1 %v5172_v17, %s4602_s15 }
0x197e   :  { %3404 = vrot.lane.b32.xlu1 %v5174_v21, %s4602_s15 }
0x1982   :  { %3412 = vrot.lane.b32.xlu1 %v3066_v54, %s4603_s16 }
0x19ea   :  { %v3228_v12 = vpop.xlane.xlu0 %3227 }
0x19eb   :  { %v3232_v13 = vsub.f32 %v3145_v3, %v3228_v12  ;;  %v3957_v12 = vld [vmem:[%s5373_s6 + $0x38] sm:$0xff] }
0x19ed   :  { %v3234_v57 = vmul.f32 1.442695, %v3232_v13  ;;  %v3956_v13 = vld [vmem:[%s5373_s6 + $0x30] sm:$0xff] }
0x19ee   :  { %v3231_v20 = vpop.xlane.xlu1 %3230 }
0x19ef   :  { %4545 = vpow2.f32 %v3234_v57  ;;  %v3233_v63 = vsub.f32 %v3223_v7, %v3231_v20  ;;  %v3955_v57 = vld [vmem:[%s5373_s6 + $0x28] sm:$0xff]  ;;  %v3954_v20 = vld [vmem:[%s5373_s6 + $0x20] sm:$0xff] }
0x19f1   :  { %v3236_v22 = vmul.f32 1.442695, %v3233_v63 }
0x19f2   :  { %v3325_v42 = vpop.permute.xlu1 %3324 }
0x19f3   :  { %4547 = vpow2.f32 %v3236_v22  ;;  %4384 = vmatpush3.msra.mxu1 %v3325_v42 }
0x19f4   :  { %4399 = vmatprep.subr.mxu1 %v3957_v12 }
0x19f6   :  { %v3403_v44 = vpop.permute.xlu1 %3402 }
0x19f7   :  { %v3424_v48 = vsel %vm269_vm3, %v5132_v33, %v3403_v44  ;;  %v3521_v33 = vrot.slane %v5061_v45, %v1706_v37  ;;  %v3969_v44 = vld [vmem:[%s5374_s7 + $0xb8] sm:$0xff] }
0x19fa   :  { %v3405_v46 = vpop.permute.xlu1 %3404 }
0x19fb   :  { %v3425_v53 = vsel %vm269_vm3, %v5134_v35, %v3405_v46  ;;  %v3968_v46 = vld [vmem:[%s5374_s7 + $0xb0] sm:$0xff] }
0x19fc   :  { %v4546_v23 = vpop.eup %4545 }
0x19fd   :  { %v3238_v62 = vsel %vm269_vm3, %v4546_v23, 0.0 }
0x19fe   :  { %3239 = vadd.xlane.f32.xlu0 %v3238_v62  ;;  %v3413_v49 = vpop.permute.xlu1 %3412 }
0x19ff   :  { %v3427_v56 = vsel %vm1611_vm5, %v3425_v53, %v3413_v49  ;;  %v3965_v49 = vld [vmem:[%s5374_s7 + $0x98] sm:$0xff]  ;;  %v3570_v53 = vrot.slane %v5061_v45, %v1754_v39 }
0x1a00   :  { %v4548_v17 = vpop.eup %4547 }
0x1a01   :  { %v3241_v55 = vsel %vm269_vm3, %v4548_v17, 0.0 }
0x1a02   :  { %3242 = vadd.xlane.f32.xlu0 %v3241_v55  ;;  %v3553_v55 = vrot.slane %v5061_v45, %v1738_v18  ;;  %v3977_v18 = vld [vmem:[%s5374_s7 + $0xf8] sm:$0xff] }
0x1a18   :  { %3248 = vrot.lane.b32.xlu0 %v5078_v1, %s4601_s14  ;;  %v3951_v1 = vld [vmem:[%s5372_s5 + $0x38] sm:$0xff] }
0x1a1c   :  { %3410 = vrot.lane.b32.xlu0 %v2990_v43, %s4603_s16 }
0x1a87   :  { %v3240_v21 = vpop.xlane.xlu0 %3239 }
0x1a88   :  { %4549 = vrcp.f32 %v3240_v21 }
0x1a8b   :  { %v3243_v24 = vpop.xlane.xlu0 %3242 }
0x1a8c   :  { %4551 = vrcp.f32 %v3243_v24 }
0x1a8f   :  { %v3249_v59 = vpop.permute.xlu0 %3248 }
0x1a90   :  { %4379 = vmatpush3.msra.mxu0 %v3249_v59  ;;  %v3559_v59 = vrot.slane %v5061_v45, %v1744_v19  ;;  %v3976_v19 = vld [vmem:[%s5374_s7 + $0xf0] sm:$0xff] }
0x1a91   :  { %4388 = vmatprep.subr.mxu0 %v3951_v1 }
0x1a93   :  { %v3411_v47 = vpop.permute.xlu0 %3410 }
0x1a94   :  { %v3426_v50 = vsel %vm1611_vm5, %v3424_v48, %v3411_v47  ;;  %v3967_v47 = vld [vmem:[%s5374_s7 + $0xa8] sm:$0xff]  ;;  %v3966_v48 = vld [vmem:[%s5374_s7 + $0xa0] sm:$0xff] }
0x1a95   :  { %v4550_v25 = vpop.eup %4549 }
0x1a96   :  { %v3245_v58 = vmul.f32 %v4550_v25, %v4546_v23 }
0x1a98   :  { %4381 = vmatmul.mubr.msk.f32.vlgmr.msra.gmra.mxu0 %vm269_vm3, %v3245_v58 }
0x1a99   :  { %v4552_v26 = vpop.eup %4551  ;;  %4389 = vmatpush3.msra.mxu0 %v3951_v1 }
0x1a9a   :  { %v3247_v27 = vmul.f32 %v4552_v26, %v4548_v17  ;;  %4390 = vmatprep.subr.mxu0 %v3950_v28 }
0x1a9b   :  { %4391 = vmatpush3.msra.mxu0 %v3950_v28 }
0x1a9c   :  { %4386 = vmatmul.mubr.msk.f32.vlgmr.msra.gmra.mxu1 %vm269_vm3, %v3247_v27  ;;  %4392 = vmatprep.subr.mxu0 %v3949_v29 }
0x1a9d   :  { %4393 = vmatpush3.msra.mxu0 %v3949_v29  ;;  %4400 = vmatpush3.msra.mxu1 %v3957_v12  ;;  %v3975_v29 = vld [vmem:[%s5374_s7 + $0xe8] sm:$0xff] }
0x1a9e   :  { %4394 = vmatprep.subr.mxu0 %v3948_v31  ;;  %4401 = vmatprep.subr.mxu1 %v3956_v13 }
0x1a9f   :  { %4395 = vmatpush3.msra.mxu0 %v3948_v31  ;;  %4402 = vmatpush3.msra.mxu1 %v3956_v13  ;;  %v3974_v31 = vld [vmem:[%s5374_s7 + $0xe0] sm:$0xff] }
0x1aa0   :  { %4403 = vmatprep.subr.mxu1 %v3955_v57  ;;  %4410 = vmatprep.subr.mxu0 %v3977_v18 }
0x1aa1   :  { %4404 = vmatpush3.msra.mxu1 %v3955_v57  ;;  %v3768_v57 = vld [vmem:[%s5369_s2] sm:$0x3] }
0x1aa2   :  { %4405 = vmatprep.subr.mxu1 %v3954_v20 }
0x1aa3   :  { %4406 = vmatpush3.msra.mxu1 %v3954_v20 }
0x1aa4   :  { %4445 = vmatprep.subr.mxu1 %v4589_v30 }
0x1b58   :  { %v3320_v32 = vpop.f32.mrf.mxu0 }
0x1b59   :  { %3418 = vrot.lane.b32.xlu0 %v3320_v32, %s4604_s20  ;;  %v3973_v32 = vld [vmem:[%s5374_s7 + $0xd8] sm:$0xff] }
0x1b5a   :  { %v4382_v34 = vpop.f32.mrf.mxu0 }
0x1b5b   :  { %v3972_v34 = vld [vmem:[%s5374_s7 + $0xd0] sm:$0xff] }
0x1b5c   :  { %v3396_v36 = vpop.f32.mrf.mxu1 }
0x1b5d   :  { %3420 = vrot.lane.b32.xlu1 %v3396_v36, %s4604_s20  ;;  %v3971_v36 = vld [vmem:[%s5374_s7 + $0xc8] sm:$0xff] }
0x1b5e   :  { %v4387_v38 = vpop.f32.mrf.mxu1 }
0x1b5f   :  { %v3970_v38 = vld [vmem:[%s5374_s7 + $0xc0] sm:$0xff] }
0x1bcb   :  { %v3419_v51 = vpop.permute.xlu0 %3418 }
0x1bcc   :  { %v3428_v52 = vsel %vm1614_vm6, %v3426_v50, %v3419_v51  ;;  %v3964_v50 = vld [vmem:[%s5374_s7 + $0x90] sm:$0xff]  ;;  %v3963_v51 = vld [vmem:[%s5374_s7 + $0x88] sm:$0xff] }
0x1bcd   :  { %4396 = vmatprep.mubr.msk.f32.mxu0 %vm137_vm1, %v3428_v52  ;;  %v3962_v52 = vld [vmem:[%s5374_s7 + $0x80] sm:$0xff] }
0x1bcf   :  { %v3421_v60 = vpop.permute.xlu1 %3420 }
0x1bd0   :  { %v3429_v41 = vsel %vm1614_vm6, %v3427_v56, %v3421_v60 }
0x1bd1   :  { %4397 = vmatmul.mubr.msk.f32.vlgmr.msra.gmra.mxu0 %vm137_vm1, %v3429_v41 }
0x1bd2   :  { %4411 = vmatpush3.msra.mxu0 %v3977_v18 }
0x1bd3   :  { %4412 = vmatprep.subr.mxu0 %v3976_v19 }
0x1bd4   :  { %4413 = vmatpush3.msra.mxu0 %v3976_v19 }
0x1bd5   :  { %4414 = vmatprep.subr.mxu0 %v3975_v29 }
0x1bd6   :  { %4415 = vmatpush3.msra.mxu0 %v3975_v29 }
0x1bd7   :  { %4416 = vmatprep.subr.mxu0 %v3974_v31 }
0x1bd8   :  { %4417 = vmatpush3.msra.mxu0 %v3974_v31 }
0x1bd9   :  { %4418 = vmatprep.subr.mxu0 %v3973_v32 }
0x1bda   :  { %4419 = vmatpush3.msra.mxu0 %v3973_v32 }
0x1bdb   :  { %4420 = vmatprep.subr.mxu0 %v3972_v34 }
0x1bdc   :  { %4421 = vmatpush3.msra.mxu0 %v3972_v34 }
0x1bdd   :  { %4422 = vmatprep.subr.mxu0 %v3971_v36 }
0x1bde   :  { %4423 = vmatpush3.msra.mxu0 %v3971_v36 }
0x1bdf   :  { %4424 = vmatprep.subr.mxu0 %v3970_v38 }
0x1be0   :  { %4425 = vmatpush3.msra.mxu0 %v3970_v38 }
0x1be1   :  { %4426 = vmatprep.subr.mxu0 %v3969_v44 }
0x1be2   :  { %4427 = vmatpush3.msra.mxu0 %v3969_v44 }
0x1be3   :  { %4428 = vmatprep.subr.mxu0 %v3968_v46 }
0x1be4   :  { %4429 = vmatpush3.msra.mxu0 %v3968_v46 }
0x1be5   :  { %4430 = vmatprep.subr.mxu0 %v3967_v47 }
0x1be6   :  { %4431 = vmatpush3.msra.mxu0 %v3967_v47 }
0x1be7   :  { %4432 = vmatprep.subr.mxu0 %v3966_v48 }
0x1be8   :  { %4433 = vmatpush3.msra.mxu0 %v3966_v48 }
0x1be9   :  { %4434 = vmatprep.subr.mxu0 %v3965_v49 }
0x1bea   :  { %4435 = vmatpush3.msra.mxu0 %v3965_v49 }
0x1beb   :  { %4436 = vmatprep.subr.mxu0 %v3964_v50 }
0x1bec   :  { %4437 = vmatpush3.msra.mxu0 %v3964_v50 }
0x1bed   :  { %4438 = vmatprep.subr.mxu0 %v3963_v51 }
0x1bee   :  { %4439 = vmatpush3.msra.mxu0 %v3963_v51 }
0x1bef   :  { %4440 = vmatprep.subr.mxu0 %v3962_v52 }
0x1bf0   :  { %4441 = vmatpush3.msra.mxu0 %v3962_v52 }
0x1c91   :  { %v4398_v61 = vpop.f32.mrf.mxu0 }
0x1c92   :  { %v3517_v0 = vadd.f32 %v4398_v61, %v5032_v16 }
0x1c93   :  { %v3507_v43 = vpop.f32.mrf.mxu0 }
0x1c94   :  { %v5258_v2 = vadd.f32 %v3521_v33, %v3517_v0  ;;  %v3516_v54 = vadd.f32 %v3507_v43, %v5035_v11 }
0x1c96   :  { %v5261_v35 = vadd.f32 %v3521_v33, %v3516_v54  ;;  %v3527_v15 = vsel %vm137_vm1, %v5258_v2, 0.0 }
0x1c97   :  { %3528 = vadd.xlane.f32.xlu1 %v3527_v15 }
0x1c98   :  { %v3524_v3 = vsel %vm137_vm1, %v5261_v35, 0.0 }
0x1c99   :  { %3525 = vadd.xlane.f32.xlu0 %v3524_v3 }
0x1d20   :  { %v3529_v4 = vpop.xlane.xlu1 %3528 }
0x1d21   :  { %v3531_v37 = vmul.f32 0.03125, %v3529_v4 }
0x1d22   :  { %v3526_v14 = vpop.xlane.xlu0 %3525 }
0x1d23   :  { %v3530_v5 = vmul.f32 0.03125, %v3526_v14  ;;  %v3533_v16 = vsub.f32 %v5258_v2, %v3531_v37 }
0x1d25   :  { %v3532_v6 = vsub.f32 %v5261_v35, %v3530_v5  ;;  %v3535_v8 = vmul.f32 %v3533_v16, %v3533_v16 }
0x1d27   :  { %v3534_v7 = vmul.f32 %v3532_v6, %v3532_v6  ;;  %v3539_v10 = vsel %vm137_vm1, %v3535_v8, 0.0 }
0x1d29   :  { %v3536_v11 = vsel %vm137_vm1, %v3534_v7, 0.0 }
0x1d2a   :  { %3537 = vadd.xlane.f32.xlu0 %v3536_v11 }
0x1d2e   :  { %3540 = vadd.xlane.f32.xlu0 %v3539_v10 }
0x1db3   :  { %v3538_v63 = vpop.xlane.xlu0 %3537 }
0x1db4   :  { %v3542_v22 = vmul.f32 0.03125, %v3538_v63 }
0x1db6   :  { %v3544_v42 = vadd.f32 1e-05, %v3542_v22 }
0x1db7   :  { %v3541_v23 = vpop.xlane.xlu0 %3540 }
0x1db8   :  { %4553 = vrsqrt.f32 %v3544_v42  ;;  %v3543_v62 = vmul.f32 0.03125, %v3541_v23 }
0x1dba   :  { %v3545_v17 = vadd.f32 1e-05, %v3543_v62 }
0x1dbc   :  { %4555 = vrsqrt.f32 %v3545_v17  ;;  %v3979_v17 = vld [vmem:[%s5376_s9] ss:$0 sm:$0xff] }
0x1dc5   :  { %v4554_v21 = vpop.eup %4553 }
0x1dc6   :  { %v3548_v24 = vmul.f32 %v4554_v21, %v3532_v6  ;;  %v3765_v6 = vrot.slane %v5061_v45, %v1948_v9  ;;  %v3980_v21 = vld [vmem:[%s5376_s9 + $0x1] ss:$0 sm:$0xff] }
0x1dc8   :  { %v3554_v25 = vmul.f32 %v3553_v55, %v3548_v24 }
0x1dc9   :  { %v4556_v58 = vpop.eup %4555 }
0x1dca   :  { %v3549_v26 = vmul.f32 %v4556_v58, %v3533_v16  ;;  %v3560_v27 = vadd.f32 %v3559_v59, %v3554_v25 }
0x1dcc   :  { %v3555_v1 = vmul.f32 %v3553_v55, %v3549_v26  ;;  %4407 = vmatprep.mubr.msk.f32.mxu1 %vm137_vm1, %v3560_v27 }
0x1dce   :  { %v3561_v28 = vadd.f32 %v3559_v59, %v3555_v1 }
0x1dd0   :  { %4408 = vmatmul.mubr.msk.f32.vlgmr.msra.gmra.mxu1 %vm137_vm1, %v3561_v28 }
0x1dd1   :  { %4449 = vmatprep.mubr.msk.f32.mxu1 %vm4590_vm2, %v4589_v30 }
0x1e90   :  { %v4409_v56 = vpop.f32.mrf.mxu1 }
0x1e91   :  { %v3649_v60 = vadd.f32 %v4409_v56, %v3570_v53 }
0x1e92   :  { %v3643_v41 = vpop.f32.mrf.mxu1 }
0x1e93   :  { %v3961_v33 = vmul.f32 -1.702, %v3649_v60  ;;  %v3644_v61 = vadd.f32 %v3643_v41, %v3570_v53 }
0x1e95   :  { %v3658_v0 = vmul.f32 1.442695, %v3961_v33  ;;  %v3960_v43 = vmul.f32 -1.702, %v3644_v61 }
0x1e97   :  { %4557 = vpow2.f32 %v3658_v0  ;;  %v3656_v54 = vmul.f32 1.442695, %v3960_v43 }
0x1e99   :  { %4559 = vpow2.f32 %v3656_v54 }
0x1ea4   :  { %v4558_v15 = vpop.eup %4557 }
0x1ea5   :  { %v3661_v3 = vadd.f32 1.0, %v4558_v15 }
0x1ea6   :  { %v4560_v4 = vpop.eup %4559 }
0x1ea7   :  { %v3660_v37 = vadd.f32 1.0, %v4560_v4  ;;  %4561 = vrcp.f32 %v3661_v3 }
0x1ea9   :  { %4563 = vrcp.f32 %v3660_v37 }
0x1eb4   :  { %v4562_v14 = vpop.eup %4561 }
0x1eb5   :  { %v3667_v39 = vmul.f32 %v4562_v14, %v3649_v60 }
0x1eb6   :  { %v4564_v5 = vpop.eup %4563 }
0x1eb7   :  { %v3666_v16 = vmul.f32 %v4564_v5, %v3644_v61 }
0x1eb9   :  { %4442 = vmatprep.mubr.f32.mxu0 %v3666_v16 }
0x1eba   :  { %4443 = vmatmul.mubr.f32.vlgmr.msra.gmra.mxu0 %v3667_v39 }
0x1f7a   :  { %v4444_v7 = vpop.f32.mrf.mxu0 }
0x1f7b   :  { %v3761_v11 = vadd.f32 %v4444_v7, %v5258_v2 }
0x1f7c   :  { %v3751_v8 = vpop.f32.mrf.mxu0 }
0x1f7d   :  { %v3767_v10 = vadd.f32 %v3765_v6, %v3761_v11  ;;  %v3760_v12 = vadd.f32 %v3751_v8, %v5261_v35 }
0x1f7f   :  { %v3766_v13 = vadd.f32 %v3765_v6, %v3760_v12  ;;  %4446 = vmatpush3.msra.mxu1 %v3767_v10 }
0x1f80   :  { %4447 = vmatprep.subr.mxu1 %v4589_v30 }
0x1f81   :  { %4448 = vmatpush3.msra.mxu1 %v3766_v13 }
0x1f82   :  { %4450 = vmatmul.mubr.msk.f32.vlgmr.msra.gmra.mxu1 %vm1611_vm5, %v3768_v57 }
0x2042   :  { %v3838_v40 = vpop.f32.mrf.mxu1 }
0x2043   :  { %v3845_v9 = vsel %vm3844_vm7, %v3838_v40, 0.0 }
0x2044   :  { %3846 = vadd.xlane.f32.xlu0 %v3845_v9  ;;  %v4451_v45 = vpop.f32.mrf.mxu1 }
0x20cd   :  { %v3847_v2 = vpop.xlane.xlu0 %3846 }
0x20ce   :  { %v3848_v20 = vmul.f32 0.03125, %v3847_v2 }
0x20d0   :  { %v3849_v35 = vsub.f32 %v3838_v40, %v3848_v20 }
0x20d2   :  { %v3850_v63 = vmul.f32 %v3849_v35, %v3849_v35 }
0x20d4   :  { %v3851_v22 = vsel %vm3844_vm7, %v3850_v63, 0.0 }
0x20d5   :  { %3852 = vadd.xlane.f32.xlu1 %v3851_v22 }
0x215e   :  { %v3853_v42 = vpop.xlane.xlu1 %3852 }
0x215f   :  { %v3854_v23 = vmul.f32 0.03125, %v3853_v42 }
0x2161   :  { %v3855_v62 = vadd.f32 1e-05, %v3854_v23 }
0x2163   :  { %4565 = vrsqrt.f32 %v3855_v62 }
0x2170   :  { %v4566_v30 = vpop.eup %4565 }
0x2171   :  { %v3857_v55 = vmul.f32 %v4566_v30, %v3849_v35 }
0x2173   :  { %v3862_v24 = vmul.f32 %v3979_v17, %v3857_v55 }
0x2175   :  { %v3867_v59 = vadd.f32 %v3980_v21, %v3862_v24 }
0x2177   :  { %3868 = vst.msk [vmem:[#allocation2] sm:$0x3] %vm3844_vm7, %v3867_v59 }
0x2178   :  { %4578 = shalt.err (!%p4575_p4)
}
0x2179   :  { %3878 = dma.vmem_to_hbm [thread:$0]  %s3876_s17, 32, %s5377_s10, [#allocation3]  }
0x217a   :  { %4587 = dma.done.wait [#allocation3], 32  }
0x217b   :  { %4588 = vsyncadd [#allocation3], 4294967264 }
0x217c   :  { %3882 = vsyncpa [#allocation3], 1 }

</bundles_post_ra>
